<compile_context>
chip_gen: v7x
topology: tpu7x:2x2x1
jax: 0.10.0
libtpu: 0.0.40
codegen_flags: <defaults>
</compile_context>

<pallas_src>
import jax
import jax.numpy as jnp
from jax.experimental import pallas as pl
from jax.experimental.pallas import tpu as pltpu

# --- module hyper-parameters (consistent with ehrEncoding.__init__) ----------
VOCAB = 32                       # vocab_size
SEQ = 16                         # max_seq_len
EMB = 8                          # emb_dim
KSZ = 3                          # kernel_size
CH = EMB // 2                    # ch_l1
PAD = (KSZ - 1) // 2             # padding
FEAT = (SEQ + 2 * PAD - KSZ + 1) + 2 * PAD - KSZ + 1   # == SEQ for odd KSZ
H1, H2 = 256, 128                # linear widths
OUT = VOCAB * SEQ                # 512 (linear4 width)
SV = SEQ * VOCAB                 # 512 (one-hot width)
LPAD = 128                       # conv feature dim CH*SEQ=64 zero-padded to 128 lanes

B = 256                          # demo batch (fills MXU rows, 2 grid steps)
BT = 128                         # batch tile per grid step

# cheap in-kernel lane indexing uses bitwise-and instead of integer remainder
assert VOCAB & (VOCAB - 1) == 0 and SEQ & (SEQ - 1) == 0
assert B % BT == 0 and FEAT == SEQ and CH * SEQ <= LPAD

# --- row offsets inside the single bf16 weight slab (all multiples of 16, the
# --- bf16 sublane tile, so in-kernel static slices stay tile-aligned) --------
R_REP = 0                        # (SEQ,  SV)    token-replication matrix
R_WEC = R_REP + SEQ              # (SV,   LPAD)  fused embedding x conv weight
R_W1 = R_WEC + SV                # (LPAD, H1)
R_W2 = R_W1 + LPAD               # (H1,   H2)
R_W3 = R_W2 + H1                 # (H2,   H1)
R_W4 = R_W3 + H2                 # (H1,   OUT)
WS_ROWS = R_W4 + H1              # 1296
WS_COLS = 512                    # slab lane width (max of all weight widths)


def ehr_kernel(tok_ref, ws_ref, bias_ref, out_ref, enc_ref):
    f32, bf16 = jnp.float32, jnp.bfloat16

    # ---- static, tile-aligned views into the coalesced slabs -----------------
    rep = ws_ref[R_REP:R_REP + SEQ, :SV]          # bf16 (16, 512)
    wec = ws_ref[R_WEC:R_WEC + SV, :LPAD]         # bf16 (512, 128)
    w1 = ws_ref[R_W1:R_W1 + LPAD, :H1]            # bf16 (128, 256)
    w2 = ws_ref[R_W2:R_W2 + H1, :H2]              # bf16 (256, 128)
    w3 = ws_ref[R_W3:R_W3 + H2, :H1]              # bf16 (128, 256)
    w4 = ws_ref[R_W4:R_W4 + H1, :OUT]             # bf16 (256, 512)
    bcf = bias_ref[0:1, :LPAD]                    # f32 biases
    b1 = bias_ref[1:2, :H1]
    b2 = bias_ref[2:3, :H2]
    b3 = bias_ref[3:4, :H1]
    b4 = bias_ref[4:5, :OUT]

    # ---- embedding gather as a one-hot built on the MXU (bf16, exact: ids<=31)
    # tok_rep[b, t*VOCAB + v] = tok[b, t]; compare against the lane's vocab id.
    tok_rep = jnp.dot(tok_ref[...].astype(bf16), rep, preferred_element_type=f32)
    v_iota = jax.lax.broadcasted_iota(jnp.int32, tok_rep.shape, 1) & (VOCAB - 1)
    onehot = (v_iota.astype(f32) == tok_rep).astype(bf16)        # (bt, SV)

    # ---- embedding-lookup x Conv1d fused into ONE bf16 MXU push.  wec columns
    # are already in torch's channel-major flatten order c*SEQ + t (cols >= 64
    # are zero padding), so the result IS the pre-pool feature map. -----------
    conv = jnp.dot(onehot, wec, preferred_element_type=f32) + bcf  # (bt, LPAD) f32
    conv = jnp.maximum(conv, 0.0)                                  # ReLU

    # ---- MaxPool1d(KSZ, stride=1, padding=PAD) via XLU lane rolls + lane mask.
    # ReLU output >= 0, so masking to 0 at sequence-segment edges is exactly
    # torch's implicit -inf padding. -------------------------------------------
    t_lane = jax.lax.broadcasted_iota(jnp.int32, conv.shape, 1) & (SEQ - 1)
    pooled = conv
    for k in range(KSZ):
        s = k - PAD
        if s == 0:
            continue
        shifted = pltpu.roll(conv, shift=(-s) % LPAD, axis=1)      # [i] = conv[i+s]
        ok = (t_lane < SEQ - s) if s > 0 else (t_lane >= -s)
        pooled = jnp.maximum(pooled, jnp.where(ok, shifted, 0.0))

    # ---- linear1 (+ dropout) + ReLU ------------------------------------------
    # TODO(synk): F.dropout (training-mode default p=0.5) is stochastic; applied
    # here as identity (inference behaviour).
    h1 = jnp.maximum(
        jnp.dot(pooled.astype(bf16), w1, preferred_element_type=f32) + b1, 0.0)

    # ---- linear2 -> encoded_vect ----------------------------------------------
    enc = jnp.dot(h1.astype(bf16), w2, preferred_element_type=f32) + b2
    enc_ref[...] = enc

    # ---- linear3 + ReLU, linear4 ----------------------------------------------
    h3 = jnp.maximum(
        jnp.dot(enc.astype(bf16), w3, preferred_element_type=f32) + b3, 0.0)
    out_ref[...] = jnp.dot(h3.astype(bf16), w4, preferred_element_type=f32) + b4


# ---------------------- wrapper-side (one-time) weight packing -----------------
def prep_params(params):
    """Fuses / rearranges the module weights into two kernel-ready slabs.

    Done once per model (pure layout plumbing + the exact linear fold
    Wec[(t',v),(c,t)] = sum_e E[v,e] * Wc[c,e,t'-t+PAD])."""
    (E, Wc, bc, W1, b1, W2, b2, W3, b3, W4, b4) = params
    f32, bf16 = jnp.float32, jnp.bfloat16

    # Rep[s, t*VOCAB + v] = 1[s == t]: replicates each token over its lane group.
    rep = jnp.repeat(jnp.eye(SEQ, dtype=f32), VOCAB, axis=1)          # (SEQ, SV)

    # Fused (embedding table x Conv1d Toeplitz) weight, columns at c*SEQ + t,
    # zero-padded from CH*SEQ=64 up to LPAD=128 lanes.
    EW = jnp.einsum('ve,cek->vck', E, Wc)                             # (VOCAB, CH, KSZ)
    tp = jnp.arange(SEQ)[:, None]                                     # t' (input pos)
    tt = jnp.arange(SEQ)[None, :]                                     # t  (output pos)
    kk = tp - tt + PAD
    valid = ((kk >= 0) & (kk < KSZ)).astype(f32)                      # (SEQ, SEQ) [t', t]
    wec4 = EW[:, :, jnp.clip(kk, 0, KSZ - 1)] * valid[None, None]     # [v,c,t',t]
    wec = jnp.transpose(wec4, (2, 0, 1, 3)).reshape(SV, CH * SEQ)
    wec = jnp.pad(wec, ((0, 0), (0, LPAD - CH * SEQ)))                # (SV, LPAD)

    w1 = jnp.pad(W1.T, ((0, LPAD - CH * SEQ), (0, 0)))                # (LPAD, H1)

    # --- single bf16 weight slab, 512 lanes wide --------------------------------
    def place(slab, row, mat):
        r, c = mat.shape
        return slab.at[row:row + r, :c].set(mat)

    slab = jnp.zeros((WS_ROWS, WS_COLS), f32)
    slab = place(slab, R_REP, rep)
    slab = place(slab, R_WEC, wec)
    slab = place(slab, R_W1, w1)
    slab = place(slab, R_W2, W2.T)
    slab = place(slab, R_W3, W3.T)
    slab = place(slab, R_W4, W4.T)
    slab = slab.astype(bf16)

    # --- single f32 bias slab (8 x 512) -----------------------------------------
    bcf = jnp.pad(jnp.repeat(bc, SEQ), (0, LPAD - CH * SEQ))          # bias at lane c*SEQ+t
    biases = jnp.zeros((8, WS_COLS), f32)
    for row, b in ((0, bcf), (1, b1), (2, b2), (3, b3), (4, b4)):
        biases = biases.at[row, :b.shape[0]].set(b)

    return slab, biases


def ehr_forward(x, prepped):
    nb = x.shape[0]
    bt = BT if nb % BT == 0 else nb
    ws, biases = prepped

    out2d, enc = pl.pallas_call(
        ehr_kernel,
        out_shape=(jax.ShapeDtypeStruct((nb, OUT), jnp.float32),
                   jax.ShapeDtypeStruct((nb, H2), jnp.float32)),
        grid=(nb // bt,),
        in_specs=[
            pl.BlockSpec((bt, SEQ), lambda i: (i, 0)),                # tokens (batched)
            pl.BlockSpec((WS_ROWS, WS_COLS), lambda i: (0, 0)),       # weight slab (resident)
            pl.BlockSpec((8, WS_COLS), lambda i: (0, 0)),             # bias slab (resident)
        ],
        out_specs=(pl.BlockSpec((bt, OUT), lambda i: (i, 0)),
                   pl.BlockSpec((bt, H2), lambda i: (i, 0))),
        compiler_params=pltpu.CompilerParams(
            dimension_semantics=("parallel",)),
    )(x.astype(jnp.int32), ws, biases)

    out = out2d.reshape(nb, VOCAB, SEQ)   # == torch .view(-1, vocab, seq)
    return out, enc


# --------------------------- pure-JAX reference --------------------------------
def reference(x, params):
    (E, Wc, bc, W1, b1, W2, b2, W3, b3, W4, b4) = params
    hp = jax.lax.Precision.HIGHEST
    n = x.shape[0]
    emb = jnp.take(E, x, axis=0)                         # (n, SEQ, EMB)
    e = jnp.transpose(emb, (0, 2, 1))                    # (n, EMB, SEQ)
    ep = jnp.pad(e, ((0, 0), (0, 0), (PAD, PAD)))
    conv = bc[None, :, None] + sum(
        jnp.einsum('ce,bet->bct', Wc[:, :, k], ep[:, :, k:k + SEQ], precision=hp)
        for k in range(KSZ))
    r = jnp.maximum(conv, 0.0)
    rp = jnp.pad(r, ((0, 0), (0, 0), (PAD, PAD)), constant_values=-jnp.inf)
    pooled = rp[:, :, 0:SEQ]
    for k in range(1, KSZ):
        pooled = jnp.maximum(pooled, rp[:, :, k:k + SEQ])
    flat = pooled.reshape(n, CH * FEAT)
    h1 = jnp.maximum(jnp.dot(flat, W1.T, precision=hp) + b1, 0.0)
    enc = jnp.dot(h1, W2.T, precision=hp) + b2
    h3 = jnp.maximum(jnp.dot(enc, W3.T, precision=hp) + b3, 0.0)
    o = jnp.dot(h3, W4.T, precision=hp) + b4
    return o.reshape(n, VOCAB, SEQ), enc


def init_params(key):
    ks = jax.random.split(key, 11)
    emb = jax.random.normal(ks[0], (VOCAB, EMB), jnp.float32) * 0.1
    emb = emb.at[0].set(0.0)                                  # padding_idx=0
    Wc = jax.random.normal(ks[1], (CH, EMB, KSZ), jnp.float32) * 0.1
    bc = jax.random.normal(ks[2], (CH,), jnp.float32) * 0.1
    W1 = jax.random.normal(ks[3], (H1, CH * FEAT), jnp.float32) * 0.05
    b1 = jax.random.normal(ks[4], (H1,), jnp.float32) * 0.05
    W2 = jax.random.normal(ks[5], (H2, H1), jnp.float32) * 0.05
    b2 = jax.random.normal(ks[6], (H2,), jnp.float32) * 0.05
    W3 = jax.random.normal(ks[7], (H1, H2), jnp.float32) * 0.05
    b3 = jax.random.normal(ks[8], (H1,), jnp.float32) * 0.05
    W4 = jax.random.normal(ks[9], (VOCAB * SEQ, H1), jnp.float32) * 0.05
    b4 = jax.random.normal(ks[10], (VOCAB * SEQ,), jnp.float32) * 0.05
    return (emb, Wc, bc, W1, b1, W2, b2, W3, b3, W4, b4)


if __name__ == "__main__":
    key = jax.random.PRNGKey(0)
    kp, kx = jax.random.split(key)
    params = init_params(kp)
    x = jax.random.randint(kx, (B, SEQ), 0, VOCAB, dtype=jnp.int32)

    prepped = prep_params(params)        # one-time weight packing (not per step)
    fwd = jax.jit(ehr_forward)
    out, enc = fwd(x, prepped)
    out = jax.block_until_ready(out)
    enc = jax.block_until_ready(enc)

    out_ref, enc_ref = reference(x, params)
    assert out.shape == (B, VOCAB, SEQ) and enc.shape == (B, H2)
    # discrepancy budget: bf16 weight + activation rounding only
    assert bool(jnp.allclose(enc, enc_ref, atol=5e-3, rtol=5e-2)), \
        float(jnp.max(jnp.abs(enc - enc_ref)))
    assert bool(jnp.allclose(out, out_ref, atol=5e-3, rtol=5e-2)), \
        float(jnp.max(jnp.abs(out - out_ref)))

    print("KERNEL_OK")
</pallas_src>

<mosaic_0001>
module attributes {stable_mosaic.version = 11 : i64} {
  func.func @ehr_kernel(%arg0: i32, %arg1: memref<128x16xi32, #tpu.memory_space<vmem>>, %arg2: memref<1296x512xbf16, #tpu.memory_space<vmem>>, %arg3: memref<8x512xf32, #tpu.memory_space<vmem>>, %arg4: memref<128x512xf32, #tpu.memory_space<vmem>>, %arg5: memref<128x128xf32, #tpu.memory_space<vmem>>) attributes {dimension_semantics = [#tpu.dimension_semantics<parallel>], iteration_bounds = array<i64: 2>, scalar_prefetch = 0 : i64, scratch_operands = 0 : i64, tpu.core_type = #tpu.core_type<tc>, window_params = [{transform_indices = @transform_0, window_bounds = array<i64: 128, 16>}, {pipeline_mode = #tpu.pipeline_mode<synchronous>, transform_indices = @transform_1, window_bounds = array<i64: 1296, 512>}, {pipeline_mode = #tpu.pipeline_mode<synchronous>, transform_indices = @transform_2, window_bounds = array<i64: 8, 512>}, {transform_indices = @transform_3, window_bounds = array<i64: 128, 512>}, {transform_indices = @transform_4, window_bounds = array<i64: 128, 128>}]} {
    %c0 = arith.constant 0 : index
    %c0_0 = arith.constant 0 : index
    %0 = vector.load %arg2[%c0, %c0_0] : memref<1296x512xbf16, #tpu.memory_space<vmem>>, vector<16x512xbf16>
    %c16 = arith.constant 16 : index
    %c0_1 = arith.constant 0 : index
    %1 = vector.load %arg2[%c16, %c0_1] : memref<1296x512xbf16, #tpu.memory_space<vmem>>, vector<512x128xbf16>
    %c528 = arith.constant 528 : index
    %c0_2 = arith.constant 0 : index
    %2 = vector.load %arg2[%c528, %c0_2] : memref<1296x512xbf16, #tpu.memory_space<vmem>>, vector<128x256xbf16>
    %c656 = arith.constant 656 : index
    %c0_3 = arith.constant 0 : index
    %3 = vector.load %arg2[%c656, %c0_3] : memref<1296x512xbf16, #tpu.memory_space<vmem>>, vector<256x128xbf16>
    %c912 = arith.constant 912 : index
    %c0_4 = arith.constant 0 : index
    %4 = vector.load %arg2[%c912, %c0_4] : memref<1296x512xbf16, #tpu.memory_space<vmem>>, vector<128x256xbf16>
    %c1040 = arith.constant 1040 : index
    %c0_5 = arith.constant 0 : index
    %5 = vector.load %arg2[%c1040, %c0_5] : memref<1296x512xbf16, #tpu.memory_space<vmem>>, vector<256x512xbf16>
    %c0_6 = arith.constant 0 : index
    %c0_7 = arith.constant 0 : index
    %6 = vector.load %arg3[%c0_6, %c0_7] : memref<8x512xf32, #tpu.memory_space<vmem>>, vector<1x128xf32>
    %c1 = arith.constant 1 : index
    %c0_8 = arith.constant 0 : index
    %7 = vector.load %arg3[%c1, %c0_8] : memref<8x512xf32, #tpu.memory_space<vmem>>, vector<1x256xf32>
    %c2 = arith.constant 2 : index
    %c0_9 = arith.constant 0 : index
    %8 = vector.load %arg3[%c2, %c0_9] : memref<8x512xf32, #tpu.memory_space<vmem>>, vector<1x128xf32>
    %c3 = arith.constant 3 : index
    %c0_10 = arith.constant 0 : index
    %9 = vector.load %arg3[%c3, %c0_10] : memref<8x512xf32, #tpu.memory_space<vmem>>, vector<1x256xf32>
    %c4 = arith.constant 4 : index
    %c0_11 = arith.constant 0 : index
    %10 = vector.load %arg3[%c4, %c0_11] : memref<8x512xf32, #tpu.memory_space<vmem>>, vector<1x512xf32>
    %c0_12 = arith.constant 0 : index
    %c0_13 = arith.constant 0 : index
    %11 = vector.load %arg1[%c0_12, %c0_13] : memref<128x16xi32, #tpu.memory_space<vmem>>, vector<128x16xi32>
    %12 = arith.sitofp %11 : vector<128x16xi32> to vector<128x16xbf16>
    %cst = arith.constant dense<0.000000e+00> : vector<128x512xf32>
    %13 = tpu.matmul %12, %0, %cst {dimension_numbers = #tpu.dot_dimension_numbers<[1], [0], [0], [1], [0, 0, 1, 1], [], []>} : vector<128x16xbf16>, vector<16x512xbf16>, vector<128x512xf32> -> vector<128x512xf32>
    %14 = tpu.iota {dimensions = array<i32: 1>} : vector<128x512xi32>
    %c31_i32 = arith.constant 31 : i32
    %15 = vector.broadcast %c31_i32 : i32 to vector<128x512xi32>
    %16 = arith.andi %14, %15 : vector<128x512xi32>
    %17 = arith.sitofp %16 : vector<128x512xi32> to vector<128x512xf32>
    %18 = arith.cmpf oeq, %17, %13 : vector<128x512xf32>
    %19 = arith.extui %18 : vector<128x512xi1> to vector<128x512xi32>
    %20 = arith.sitofp %19 : vector<128x512xi32> to vector<128x512xf32>
    %21 = arith.truncf %20 : vector<128x512xf32> to vector<128x512xbf16>
    %cst_14 = arith.constant dense<0.000000e+00> : vector<128x128xf32>
    %22 = tpu.matmul %21, %1, %cst_14 {dimension_numbers = #tpu.dot_dimension_numbers<[1], [0], [0], [1], [0, 0, 1, 1], [], []>} : vector<128x512xbf16>, vector<512x128xbf16>, vector<128x128xf32> -> vector<128x128xf32>
    %23 = vector.broadcast %6 : vector<1x128xf32> to vector<128x128xf32>
    %24 = arith.addf %22, %23 : vector<128x128xf32>
    %cst_15 = arith.constant 0.000000e+00 : f32
    %25 = vector.broadcast %cst_15 : f32 to vector<128x128xf32>
    %26 = arith.maximumf %24, %25 : vector<128x128xf32>
    %27 = tpu.iota {dimensions = array<i32: 1>} : vector<128x128xi32>
    %c15_i32 = arith.constant 15 : i32
    %28 = vector.broadcast %c15_i32 : i32 to vector<128x128xi32>
    %29 = arith.andi %27, %28 : vector<128x128xi32>
    %c1_i32 = arith.constant 1 : i32
    %30 = tpu.dynamic_rotate %26 by %c1_i32 dim 1 : vector<128x128xf32>, i32 -> vector<128x128xf32>
    %c1_i32_16 = arith.constant 1 : i32
    %31 = vector.broadcast %c1_i32_16 : i32 to vector<128x128xi32>
    %32 = arith.cmpi sge, %29, %31 : vector<128x128xi32>
    %cst_17 = arith.constant 0.000000e+00 : f32
    %33 = vector.broadcast %cst_17 : f32 to vector<128x128xf32>
    %34 = arith.select %32, %30, %33 : vector<128x128xi1>, vector<128x128xf32>
    %35 = arith.maximumf %26, %34 : vector<128x128xf32>
    %c127_i32 = arith.constant 127 : i32
    %36 = tpu.dynamic_rotate %26 by %c127_i32 dim 1 : vector<128x128xf32>, i32 -> vector<128x128xf32>
    %c15_i32_18 = arith.constant 15 : i32
    %37 = vector.broadcast %c15_i32_18 : i32 to vector<128x128xi32>
    %38 = arith.cmpi slt, %29, %37 : vector<128x128xi32>
    %cst_19 = arith.constant 0.000000e+00 : f32
    %39 = vector.broadcast %cst_19 : f32 to vector<128x128xf32>
    %40 = arith.select %38, %36, %39 : vector<128x128xi1>, vector<128x128xf32>
    %41 = arith.maximumf %35, %40 : vector<128x128xf32>
    %42 = arith.truncf %41 : vector<128x128xf32> to vector<128x128xbf16>
    %cst_20 = arith.constant dense<0.000000e+00> : vector<128x256xf32>
    %43 = tpu.matmul %42, %2, %cst_20 {dimension_numbers = #tpu.dot_dimension_numbers<[1], [0], [0], [1], [0, 0, 1, 1], [], []>} : vector<128x128xbf16>, vector<128x256xbf16>, vector<128x256xf32> -> vector<128x256xf32>
    %44 = vector.broadcast %7 : vector<1x256xf32> to vector<128x256xf32>
    %45 = arith.addf %43, %44 : vector<128x256xf32>
    %cst_21 = arith.constant 0.000000e+00 : f32
    %46 = vector.broadcast %cst_21 : f32 to vector<128x256xf32>
    %47 = arith.maximumf %45, %46 : vector<128x256xf32>
    %48 = arith.truncf %47 : vector<128x256xf32> to vector<128x256xbf16>
    %cst_22 = arith.constant dense<0.000000e+00> : vector<128x128xf32>
    %49 = tpu.matmul %48, %3, %cst_22 {dimension_numbers = #tpu.dot_dimension_numbers<[1], [0], [0], [1], [0, 0, 1, 1], [], []>} : vector<128x256xbf16>, vector<256x128xbf16>, vector<128x128xf32> -> vector<128x128xf32>
    %50 = vector.broadcast %8 : vector<1x128xf32> to vector<128x128xf32>
    %51 = arith.addf %49, %50 : vector<128x128xf32>
    %c0_23 = arith.constant 0 : index
    %c0_24 = arith.constant 0 : index
    %52 = vector.load %arg5[%c0_23, %c0_24] : memref<128x128xf32, #tpu.memory_space<vmem>>, vector<128x128xf32>
    tpu.vector_store %arg5[%c0_23, %c0_24], %51 {strides = array<i32>} : memref<128x128xf32, #tpu.memory_space<vmem>>, vector<128x128xf32>,
    %53 = arith.truncf %51 : vector<128x128xf32> to vector<128x128xbf16>
    %cst_25 = arith.constant dense<0.000000e+00> : vector<128x256xf32>
    %54 = tpu.matmul %53, %4, %cst_25 {dimension_numbers = #tpu.dot_dimension_numbers<[1], [0], [0], [1], [0, 0, 1, 1], [], []>} : vector<128x128xbf16>, vector<128x256xbf16>, vector<128x256xf32> -> vector<128x256xf32>
    %55 = vector.broadcast %9 : vector<1x256xf32> to vector<128x256xf32>
    %56 = arith.addf %54, %55 : vector<128x256xf32>
    %cst_26 = arith.constant 0.000000e+00 : f32
    %57 = vector.broadcast %cst_26 : f32 to vector<128x256xf32>
    %58 = arith.maximumf %56, %57 : vector<128x256xf32>
    %59 = arith.truncf %58 : vector<128x256xf32> to vector<128x256xbf16>
    %cst_27 = arith.constant dense<0.000000e+00> : vector<128x512xf32>
    %60 = tpu.matmul %59, %5, %cst_27 {dimension_numbers = #tpu.dot_dimension_numbers<[1], [0], [0], [1], [0, 0, 1, 1], [], []>} : vector<128x256xbf16>, vector<256x512xbf16>, vector<128x512xf32> -> vector<128x512xf32>
    %61 = vector.broadcast %10 : vector<1x512xf32> to vector<128x512xf32>
    %62 = arith.addf %60, %61 : vector<128x512xf32>
    %c0_28 = arith.constant 0 : index
    %c0_29 = arith.constant 0 : index
    %63 = vector.load %arg4[%c0_28, %c0_29] : memref<128x512xf32, #tpu.memory_space<vmem>>, vector<128x512xf32>
    tpu.vector_store %arg4[%c0_28, %c0_29], %62 {strides = array<i32>} : memref<128x512xf32, #tpu.memory_space<vmem>>, vector<128x512xf32>,
    return
  }
  func.func @transform_0(%arg0: i32) -> (i32, i32) {
    %c0_i32 = arith.constant 0 : i32
    %c0_i32_0 = arith.constant 0 : i32
    return %arg0, %c0_i32 : i32, i32
  }
  func.func @transform_1(%arg0: i32) -> (i32, i32) {
    %c0_i32 = arith.constant 0 : i32
    %c0_i32_0 = arith.constant 0 : i32
    %c0_i32_1 = arith.constant 0 : i32
    return %c0_i32, %c0_i32_0 : i32, i32
  }
  func.func @transform_2(%arg0: i32) -> (i32, i32) {
    %c0_i32 = arith.constant 0 : i32
    %c0_i32_0 = arith.constant 0 : i32
    %c0_i32_1 = arith.constant 0 : i32
    return %c0_i32, %c0_i32_0 : i32, i32
  }
  func.func @transform_3(%arg0: i32) -> (i32, i32) {
    %c0_i32 = arith.constant 0 : i32
    %c0_i32_0 = arith.constant 0 : i32
    return %arg0, %c0_i32 : i32, i32
  }
  func.func @transform_4(%arg0: i32) -> (i32, i32) {
    %c0_i32 = arith.constant 0 : i32
    %c0_i32_0 = arith.constant 0 : i32
    return %arg0, %c0_i32 : i32, i32
  }
}

</mosaic_0001>

<bundles_post_ra>
// kernel: ehr_forward.1
= control target key start
LH: loop header
LB: loop body
LE: loop exit
PB: predicated region body
PF: predicated region fallthrough
CT: control target
= control target key end

     0   :  { %10 = vsyncpa [#allocation3], 0  ;;  %s4979_s0 = inlined_call_operand.vmem [shape: s32[256,16], index: 0, kind: input, shape index: {}]   ;;  %s4980_s1 = inlined_call_operand.hbm [shape: bf16[1296,512], index: 1, kind: input, shape index: {}]   ;;  %s4981_s2 = inlined_call_operand.hbm [shape: f32[8,512], index: 2, kind: input, shape index: {}]   ;;  %s4982_s3 = inlined_call_operand.vmem [shape: f32[256,512], index: 3, kind: output, shape index: {0}]   ;;  %s4983_s4 = inlined_call_operand.hbm [shape: f32[256,128], index: 4, kind: output, shape index: {1}]  }
   0x1   :  { %11 = vsyncpa [#allocation6], 0 }
   0x2   :  { %12 = vsyncpa [#allocation4], 0 }
   0x3   :  { %14 = vsyncpa [#allocation4 + $0x1], 0  ;;  %s4040_s15 = smov 0   ;;  %s4042_s16 = smov 0  }
   0x4   :  { %s4044_s17 = smov 0   ;;  %s4046_s18 = smov 0  }
   0x5 LB: > { %s4061_s19 = sadd.s32 4294967295, %s4002_s18   ;;  %s3023_s20 = sadd.s32 4294967294, %s4002_s18   ;;  %s4002_s18 = sphi %s4046_s18, %s5023_s18   ;;  %s3998_s17 = sphi %s4044_s17, %s5022_s17   ;;  %s3994_s16 = sphi %s4042_s16, %s5021_s16   ;;  %s3990_s15 = sphi %s4040_s15, %s5020_s15  }
   0x6   : > { %s4065_s21 = sadd.s32 1, %s4002_s18   ;;  %s121_s22 = sadd.s32 1, %s3998_s17 }
   0x7   : > { %s118_s23 = ssub.s32 %s4002_s18, %s4065_s21  ;;  %p131_p0 = scmp.ne.s32.totalorder %s3998_s17, %s3994_s16 }
   0x8   : > { %p119_p1 = scmp.eq.s32.totalorder %s118_s23, 0  ;;  %p132_p2 = scmp.eq.s32.totalorder %s4061_s19, 1 }
   0x9   : > { %p137_p3 = scmp.ne.s32.totalorder %s3994_s16, %s3990_s15  ;;  %p138_p4 = scmp.eq.s32.totalorder %s3023_s20, 1 }
   0xa   : > { %s4076_s24 = scalar_select %p119_p1, %s3998_s17, %s121_s22  }
   0xb   : > { %p4078_p5 = por %p132_p2, %p131_p0  ;;  %p4082_p6 = por %p138_p4, %p137_p3 }
   0xc   : > { %p3024_p7 = scmp.ge.s32.totalorder %s4002_s18, 1  ;;  %p145_p8 = scmp.lt.s32.totalorder %s4002_s18, 3 }
   0xd   : > { %s4987_s25 = scalar_select %p4078_p5, 1, 0 }
   0xe   : > { %s4988_s26 = scalar_select %p4082_p6, 1, 0 }
   0xf   : > { %p4984_p9 = scmp.eq.s32.totalorder %s4061_s19, 0  ;;  %p4089_p10 = pnand %p3024_p7, %p145_p8 }
  0x10   : > { %s4004_s28 = smov [#allocation2]   ;;  %s4005_s5 = smov [#allocation5]  }
  0x11   : > { %s4989_s27 = scalar_select %p4089_p10, 1, 0 }
  0x12   : > { %s157_s29 = sshll.u32 %s4004_s28, 4  ;;  %p3540_p11 = pneg %p4089_p10  ;;  %s158_s29 = int_to_ptr.vmem [resolvable:$true] %s157_s29 }
  0x13   : > { %s171_s6 = sshll.u32 %s4005_s5, 4  ;;  %s3876_s9 = scalar_lea.hbm %s4980_s1, 41472  ;;  %s4101_s6 = int_to_ptr.vmem [resolvable:$true] %s171_s6 }
  0x14   : > { %p4097_p12 = pnand %p4984_p9, %p3540_p11  ;;  %p3877_p13 = scmp.ne.s32.totalorder %s4980_s1, %s3876_s9 }
  0x15   : > { %p3883_p3 = scmp.lt.u32.totalorder %s3876_s9, %s4980_s1 }
  0x16   : > { %p3878_p0 = pneg %p4097_p12 }
  0x18   : > { %p3879_p1 = pnand %p3878_p0, %p3877_p13 }
  0x1a   : > { %p3880_p2 = pneg %p3879_p1 }
  0x1c   : > { %p3885_p4 = pnand %p3883_p3, %p3880_p2 }
  0x1e   : > { %3888 = shalt.err (!%p3885_p4)
}
  0x1f   : > { %s3889_s14 = scalar_lea.vmem %s158_s29, 41472  ;;  %p3897_p9 = scmp.lt.s32.totalorder %s158_s29, %s158_s29 }
  0x20   : > { %p3890_p7 = scmp.ne.s32.totalorder %s158_s29, %s3889_s14  ;;  %p3898_p6 = scmp.lt.s32.totalorder %s3889_s14, %s3889_s14 }
  0x22   : > { %p3892_p8 = pnand %p3890_p7, %p3878_p0  ;;  %p3899_p5 = por %p3898_p6, %p3897_p9 }
  0x24   : > { %p3893_p11 = pneg %p3892_p8 }
  0x26   : > { %p3900_p10 = pnand %p3899_p5, %p3893_p11 }
  0x28   : > { %3903 = shalt.err (!%p3900_p10)
}
  0x29   : > { %s4006_s20 = smov 256   ;;  %s4007_s22 = smov 16  }
  0x2a   : > { %3543 = dma.hbm_to_vmem [thread:$0]  (!%p4097_p12), %s4980_s1, 41472, %s158_s29, [#allocation3], %s4006_s20, %s4006_s20, %s4007_s22  }
  0x2b   : > { %s3904_s8 = scalar_lea.hbm %s4981_s2, 512 }
  0x2c   : > { %p3905_p13 = scmp.ne.s32.totalorder %s4981_s2, %s3904_s8  ;;  %p3911_p9 = scmp.lt.u32.totalorder %s3904_s8, %s4981_s2 }
  0x2e   : > { %p3907_p5 = pnand %p3905_p13, %p3878_p0 }
  0x30   : > { %p3908_p6 = pneg %p3907_p5 }
  0x32   : > { %p3913_p10 = pnand %p3911_p9, %p3908_p6 }
  0x34   : > { %3916 = shalt.err (!%p3913_p10)
}
  0x35   : > { %s3917_s29 = scalar_lea.vmem %s4101_s6, 512  ;;  %p3925_p4 = scmp.lt.s32.totalorder %s4101_s6, %s4101_s6 }
  0x36   : > { %p3918_p1 = scmp.ne.s32.totalorder %s4101_s6, %s3917_s29  ;;  %p3926_p7 = scmp.lt.s32.totalorder %s3917_s29, %s3917_s29 }
  0x38   : > { %p3920_p2 = pnand %p3918_p1, %p3878_p0  ;;  %p3927_p8 = por %p3926_p7, %p3925_p4 }
  0x3a   : > { %p3921_p3 = pneg %p3920_p2 }
  0x3c   : > { %p3928_p11 = pnand %p3927_p8, %p3921_p3 }
  0x3e   : > { %3931 = shalt.err (!%p3928_p11)
}
  0x3f   : > { %3546 = dma.hbm_to_vmem [thread:$0]  (!%p4097_p12), %s4981_s2, 512, %s4101_s6, [#allocation6]  }
  0x40   : > { %p4991_p13 = scmp.ne.s32.totalorder %s4989_s27, 0 }
  0x41   : > { %p4992_p5 = scmp.eq.s32.totalorder (!%p4991_p13), %s4061_s19, 0 }
  0x42   : > { %193 = sbr.rel (%p4991_p13) target bundleno = 1628 (0x65c), region = 32 }
  0x49   : > { %3977 = dma.done.wait (%p4992_p5), [#allocation3], 41472   ;;  %p4993_p0 = pmov %p4992_p5 }
  0x4b   : > { %3979 = vsyncadd (%p4993_p0), [#allocation3], 4294925824  ;;  %p4994_p6 = pmov %p4993_p0 }
  0x4c   : > { %p4995_p9 = pmov %p4993_p0 }
  0x4d   : > { %3981 = dma.done.wait (%p4994_p6), [#allocation6], 512  }
  0x4e   : > { %3983 = vsyncadd (%p4995_p9), [#allocation6], 4294966784  ;;  %s3032_s30 = sshll.u32 %s4061_s19, 4  ;;  %v4008_v0 = vmov 0   ;;  %v3678_v1 = vld [vmem:[#allocation2 + $0x4] ss:$16 sps:$4 sm:$0xff]  }
  0x4f   : > { %565 = vmatprep.mubr.bf16.mxu0 %v4008_v0  ;;  %605 = vmatprep.mubr.bf16.mxu1 %v4008_v0  ;;  %p230_p12 = scmp.lt.s32.totalorder %s3032_s30, 31  ;;  %v3680_v2 = vld [vmem:[#allocation2] ss:$16 sps:$4 sm:$0xff]   ;;  %vm508_vm0 = vcmask 130048   ;;  %v3681_v11 = vld [vmem:[#allocation2 + $0x8] ss:$16 sps:$4 sm:$0xff]  }
  0x50   : > { %533 = vmatprep.subr.bf16.mxu0 %v3678_v1  ;;  %3528 = vmatprep.subr.bf16.mxu1 %v3678_v1  ;;  %v3683_v12 = vld [vmem:[#allocation2 + $0xc] ss:$16 sps:$4 sm:$0xff]   ;;  %v3684_v23 = vld [vmem:[#allocation2 + $0x120] ss:$16 sps:$4 sm:$0xff]   ;;  %s4010_s23 = smov 1   ;;  %s4011_s28 = smov 127  }
  0x51   : > { %s5025_s30 = smov (!%p230_p12, %s3032_s30), 31  ;;  %534 = vmatpush1.bf16.msra.mxu0 %v3680_v2  ;;  %3529 = vmatpush1.bf16.msra.mxu1 %v3680_v2  ;;  %v3685_v26 = vld [vmem:[#allocation2 + $0x320] ss:$16 sps:$4 sm:$0xff]   ;;  %s226_s5 = sand.u32 1, %s3994_s16  }
  0x52   : > { %s3033_s27 = sshll.u32 %s5025_s30, 3  ;;  %646 = vmatprep.subr.bf16.mxu1 %v3683_v12  ;;  %3336 = vmatprep.subr.bf16.mxu0 %v3684_v23  ;;  %v3686_v29 = vld [vmem:[#allocation2 + $0x20] ss:$16 sps:$4 sm:$0xff]   ;;  %s3031_s7 = sshll.u32 %s226_s5, 7 }
  0x53   : > { %s4169_s22 = scalar_lea.vmem %s4979_s0, %s3033_s27  ;;  %v3688_v32 = vld [vmem:[#allocation2 + $0x140] ss:$16 sps:$4 sm:$0xff]   ;;  %s4703_s8 = scalar_lea.vmem [#allocation7], %s3031_s7 }
  0x54   : > { %v448_v3 = vld [vmem:[%s4169_s22] sm:$0xff]  ;;  %v449_v4 = vld [vmem:[%s4169_s22 + $0x8] sm:$0xff]  ;;  %v450_v14 = vld [vmem:[%s4169_s22 + $0x10] sm:$0xff]  ;;  %s3335_s9 = sshll.u32 %s4061_s19, 11  ;;  %s2913_s10 = sshll.u32 %s4703_s8, 4  ;;  %s4788_s10 = int_to_ptr.vmem [resolvable:$true] %s2913_s10 }
  0x55   : > { %v464_v5 = vcvt.s32.f32 %v448_v3  ;;  %v465_v6 = vcvt.s32.f32 %v449_v4  ;;  %v456_v7 = vld [vmem:[%s4169_s22 + $0x40] sm:$0xff]  ;;  %v457_v8 = vld [vmem:[%s4169_s22 + $0x48] sm:$0xff]  ;;  %v451_v15 = vld [vmem:[%s4169_s22 + $0x18] sm:$0xff]  ;;  %v466_v19 = vcvt.s32.f32 %v450_v14  ;;  %v759_v14 = vlaneseq  ;;  %s4786_s29 = scalar_lea.hbm %s4983_s4, %s3335_s9  ;;  %s4792_s13 = scalar_lea.sflag [#allocation4], %s226_s5 }
  0x56   : > { %v472_v9 = vcvt.s32.f32 %v456_v7  ;;  %v473_v10 = vcvt.s32.f32 %v457_v8  ;;  %v458_v16 = vld [vmem:[%s4169_s22 + $0x50] sm:$0xff]  ;;  %v459_v18 = vld [vmem:[%s4169_s22 + $0x58] sm:$0xff]  ;;  %v467_v20 = vcvt.s32.f32 %v451_v15  ;;  %v452_v24 = vld [vmem:[%s4169_s22 + $0x20] sm:$0xff]  ;;  %s3932_s14 = scalar_lea.vmem %s4788_s10, 2048  ;;  %p5018_p1 = scmp.ne.s32.totalorder %s4987_s25, 0 }
  0x57   : > { %v4175_v13 = vpack.c.bf16 %v465_v6, %v464_v5  ;;  %v474_v21 = vcvt.s32.f32 %v458_v16  ;;  %v475_v22 = vcvt.s32.f32 %v459_v18  ;;  %v453_v25 = vld [vmem:[%s4169_s22 + $0x28] sm:$0xff]  ;;  %v460_v28 = vld [vmem:[%s4169_s22 + $0x60] sm:$0xff]  ;;  %v468_v34 = vcvt.s32.f32 %v452_v24  ;;  %v454_v40 = vld [vmem:[%s4169_s22 + $0x30] sm:$0xff]  ;;  %p3933_p10 = scmp.ne.s32.totalorder %s4788_s10, %s3932_s14  ;;  %s4012_s19 = smov [#allocation7]  }
  0x58   : > { %v4180_v17 = vpack.c.bf16 %v473_v10, %v472_v9  ;;  %v4191_v27 = vpack.c.bf16 %v467_v20, %v466_v19  ;;  %v461_v31 = vld [vmem:[%s4169_s22 + $0x68] sm:$0xff]  ;;  %v3689_v33 = vld [vmem:[#allocation2 + $0x40] ss:$16 sps:$4 sm:$0xff]   ;;  %v469_v35 = vcvt.s32.f32 %v453_v25  ;;  %v476_v37 = vcvt.s32.f32 %v460_v28  ;;  %v455_v41 = vld [vmem:[%s4169_s22 + $0x38] sm:$0xff]  ;;  %s3936_s27 = sshll.u32 %s4012_s19, 4  ;;  %s3937_s27 = int_to_ptr.vmem [resolvable:$false] %s3936_s27 }
  0x59   : > { %3041 = vmatmul.mubr.msk.bf16.vlgmr.msra.gmra.mrb[0].mxu0 %vm508_vm0, %v4175_v13  ;;  %v4194_v30 = vpack.c.bf16 %v475_v22, %v474_v21  ;;  %v3690_v36 = vld [vmem:[#allocation2 + $0x160] ss:$16 sps:$4 sm:$0xff]   ;;  %v477_v38 = vcvt.s32.f32 %v461_v31  ;;  %v463_v46 = vld [vmem:[%s4169_s22 + $0x78] sm:$0xff]  ;;  %v470_v49 = vcvt.s32.f32 %v454_v40  ;;  %v471_v50 = vcvt.s32.f32 %v455_v41  ;;  %v3718_v41 = vld [vmem:[#allocation2 + $0x424] ss:$16 sps:$4 sm:$0xff]   ;;  %p3934_p2 = pnand %p3933_p10, %p5018_p1  ;;  %s3938_s6 = scalar_lea.vmem %s3937_s27, 4096 }
  0x5a   : > { %3045 = vmatmul.mubr.msk.bf16.vlgmr.msra.gmra.mrb[0].mxu1 %vm508_vm0, %v4180_v17  ;;  %575 = vmatprep.mubr.bf16.mxu0 %v4008_v0  ;;  %v3692_v39 = vld [vmem:[#allocation2 + $0x60] ss:$16 sps:$4 sm:$0xff]   ;;  %v482_v42 = vpack.c.bf16 %v469_v35, %v468_v34  ;;  %v479_v52 = vcvt.s32.f32 %v463_v46  ;;  %v4234_v15 = vand.u32 127, %v759_v14  ;;  %v4009_v31 = vmov 1.0|1.0   ;;  %p3939_p4 = scmp.lt.s32.totalorder %s4788_s10, %s3937_s27  ;;  %p3940_p7 = scmp.lt.s32.totalorder %s3938_s6, %s3932_s14 }
  0x5b   : > { %647 = vmatpush1.bf16.msra.mxu1 %v3681_v11  ;;  %615 = vmatprep.mubr.bf16.mxu1 %v4008_v0  ;;  %v462_v43 = vld [vmem:[%s4169_s22 + $0x70] sm:$0xff]  ;;  %v486_v45 = vpack.c.bf16 %v477_v38, %v476_v37  ;;  %v483_v55 = vpack.c.bf16 %v471_v50, %v470_v49  ;;  %v5004_v50 = vmov 0  ;;  %p3935_p3 = pneg %p3934_p2 }
  0x5c   : > { %3400 = vmatprep.subr.bf16.mxu1 %v3685_v26  ;;  %3337 = vmatpush3.bf16.msra.mxu0 %v3686_v29  ;;  %v3694_v44 = vld [vmem:[#allocation2 + $0x180] ss:$16 sps:$4 sm:$0xff]   ;;  %v478_v51 = vcvt.s32.f32 %v462_v43  ;;  %v761_v16 = vadd.s32 128, %v4234_v15  ;;  %p3941_p8 = por %p3940_p7, %p3939_p4 }
  0x5d   : > { %3338 = vmatprep.subr.bf16.mxu0 %v3688_v32  ;;  %v3695_v47 = vld [vmem:[#allocation2 + $0x80] ss:$16 sps:$4 sm:$0xff]  }
  0x5e   : > { %v3696_v48 = vld [vmem:[#allocation2 + $0x1a0] ss:$16 sps:$4 sm:$0xff]   ;;  %v487_v57 = vpack.c.bf16 %v479_v52, %v478_v51  ;;  %v765_v18 = vand.u32 31, %v761_v16  ;;  %v5006_v51 = vmov 0  ;;  %p3942_p11 = pnand %p3941_p8, %p3935_p3 }
  0x5f   : > { %v3698_v53 = vld [vmem:[#allocation2 + $0xa0] ss:$16 sps:$4 sm:$0xff]  }
  0x60   : > { %3339 = vmatpush3.bf16.msra.mxu0 %v3689_v33  ;;  %v3700_v54 = vld [vmem:[#allocation2 + $0x1c0] ss:$16 sps:$4 sm:$0xff]   ;;  %v4241_v23 = vcvt.s32.f32 %v765_v18 }
  0x61   : > { %3042 = vmatmul.mubr.msk.bf16.gmra.mrb[4].mxu0 %vm508_vm0, %v4191_v27  ;;  %3340 = vmatprep.subr.bf16.mxu0 %v3690_v36  ;;  %v3701_v56 = vld [vmem:[#allocation2 + $0xc0] ss:$16 sps:$4 sm:$0xff]  }
  0x62   : > { %3046 = vmatmul.mubr.msk.bf16.gmra.mrb[4].mxu1 %vm508_vm0, %v4194_v30  ;;  %585 = vmatprep.mubr.bf16.mxu0 %v4008_v0  ;;  %v3702_v58 = vld [vmem:[#allocation2 + $0x1e0] ss:$16 sps:$4 sm:$0xff]  }
  0x63   : > { %625 = vmatprep.mubr.bf16.mxu1 %v4008_v0  ;;  %v3687_v59 = vld [vmem:[#allocation2 + $0x220] ss:$16 sps:$4 sm:$0xff]  }
  0x64   : > { %3341 = vmatpush3.bf16.msra.mxu0 %v3692_v39  ;;  %v3691_v60 = vld [vmem:[#allocation2 + $0x340] ss:$16 sps:$4 sm:$0xff]  }
  0x65   : > { %3342 = vmatprep.subr.bf16.mxu0 %v3694_v44  ;;  %v3693_v61 = vld [vmem:[#allocation2 + $0x240] ss:$16 sps:$4 sm:$0xff]  }
  0x66   : > { %v3697_v62 = vld [vmem:[#allocation2 + $0x360] ss:$16 sps:$4 sm:$0xff]  }
  0x67   : > { %v3699_v63 = vld [vmem:[#allocation2 + $0x260] ss:$16 sps:$4 sm:$0xff]  }
  0x68   : > { %3343 = vmatpush3.bf16.msra.mxu0 %v3695_v47  ;;  %v3703_v1 = vld [vmem:[#allocation2 + $0x380] ss:$16 sps:$4 sm:$0xff]  }
  0x69   : > { %3043 = vmatmul.mubr.msk.bf16.gmra.mrb[8].mxu0 %vm508_vm0, %v482_v42  ;;  %3344 = vmatprep.subr.bf16.mxu0 %v3696_v48  ;;  %v3704_v2 = vld [vmem:[#allocation2 + $0xe0] ss:$16 sps:$4 sm:$0xff]  }
  0x6a   : > { %3047 = vmatmul.mubr.msk.bf16.gmra.mrb[8].mxu1 %vm508_vm0, %v486_v45  ;;  %595 = vmatprep.mubr.bf16.mxu0 %v4008_v0  ;;  %v3705_v3 = vld [vmem:[#allocation2 + $0x280] ss:$16 sps:$4 sm:$0xff]  }
  0x6b   : > { %635 = vmatprep.mubr.bf16.mxu1 %v4008_v0  ;;  %v3706_v4 = vld [vmem:[#allocation2 + $0x200] ss:$16 sps:$4 sm:$0xff]  }
  0x6c   : > { %3345 = vmatpush3.bf16.msra.mxu0 %v3698_v53  ;;  %v3707_v5 = vld [vmem:[#allocation2 + $0x100] ss:$16 sps:$4 sm:$0xff]   ;;  %v762_v53 = vadd.s32 256, %v4234_v15 }
  0x6d   : > { %3346 = vmatprep.subr.bf16.mxu0 %v3700_v54  ;;  %v3708_v6 = vld [vmem:[#allocation2 + $0x3a0] ss:$16 sps:$4 sm:$0xff]  }
  0x6e   : > { %v3709_v7 = vld [vmem:[#allocation2 + $0x2a0] ss:$16 sps:$4 sm:$0xff]  }
  0x6f   : > { %v3710_v8 = vld [vmem:[#allocation2 + $0x3c0] ss:$16 sps:$4 sm:$0xff]  }
  0x70   : > { %3347 = vmatpush3.bf16.msra.mxu0 %v3701_v56  ;;  %v3711_v9 = vld [vmem:[#allocation2 + $0x2c0] ss:$16 sps:$4 sm:$0xff]   ;;  %v763_v56 = vadd.s32 384, %v4234_v15 }
  0x71   : > { %3044 = vmatmul.mubr.msk.bf16.gmra.mrb[12].mxu0 %vm508_vm0, %v483_v55  ;;  %3348 = vmatprep.subr.bf16.mxu0 %v3702_v58  ;;  %v3712_v10 = vld [vmem:[#allocation2 + $0x3e0] ss:$16 sps:$4 sm:$0xff]  }
  0x72   : > { %3048 = vmatmul.mubr.msk.bf16.gmra.mrb[12].mxu1 %vm508_vm0, %v487_v57  ;;  %v3713_v11 = vld [vmem:[#allocation2 + $0x2e0] ss:$16 sps:$4 sm:$0xff]  }
  0x73   : > { %678 = vmatprep.mubr.bf16.mxu1 %v4008_v0  ;;  %v3714_v12 = vld [vmem:[#allocation2 + $0x400] ss:$16 sps:$4 sm:$0xff]  }
  0x74   : > { %3349 = vmatpush3.bf16.msra.mxu0 %v3704_v2  ;;  %v3716_v40 = vld [vmem:[#allocation2 + $0x420] ss:$16 sps:$4 sm:$0xff]  }
  0x75   : > { %3350 = vmatprep.subr.bf16.mxu0 %v3706_v4 }
  0x78   : > { %3351 = vmatpush3.bf16.msra.mxu0 %v3707_v5 }
  0x79   : > { %1628 = vmatprep.subr.bf16.mxu0 %v3718_v41 }
  0x7a   : > { %3049 = vmatmul.mubr.msk.bf16.vlgmr.msra.gmra.mrb[16].mxu1 %vm508_vm0, %v4175_v13  ;;  %v3715_v13 = vld [vmem:[#allocation2 + $0x300] ss:$16 sps:$4 sm:$0xff]  }
  0x7b   : > { %688 = vmatprep.mubr.bf16.mxu1 %v4008_v0  ;;  %3401 = vmatpush3.bf16.msra.mxu1 %v3687_v59 }
  0x7c   : > { %3402 = vmatprep.subr.bf16.mxu1 %v3691_v60 }
  0x7f   : > { %3403 = vmatpush3.bf16.msra.mxu1 %v3693_v61 }
  0x80   : > { %3404 = vmatprep.subr.bf16.mxu1 %v3697_v62  ;;  %v766_v62 = vand.u32 31, %v762_v53 }
  0x82   : > { %3050 = vmatmul.mubr.msk.bf16.gmra.mrb[20].mxu1 %vm508_vm0, %v4191_v27 }
  0x83   : > { %698 = vmatprep.mubr.bf16.mxu1 %v4008_v0  ;;  %3405 = vmatpush3.bf16.msra.mxu1 %v3699_v63 }
  0x84   : > { %3406 = vmatprep.subr.bf16.mxu1 %v3703_v1  ;;  %v767_v1 = vand.u32 31, %v763_v56 }
  0x86   : > { %v4321_v5 = vcvt.s32.f32 %v767_v1 }
  0x87   : > { %3407 = vmatpush3.bf16.msra.mxu1 %v3705_v3  ;;  %v4316_v3 = vcvt.s32.f32 %v766_v62 }
  0x88   : > { %3408 = vmatprep.subr.bf16.mxu1 %v3708_v6 }
  0x8a   : > { %3051 = vmatmul.mubr.msk.bf16.gmra.mrb[24].mxu1 %vm508_vm0, %v482_v42 }
  0x8b   : > { %708 = vmatprep.mubr.bf16.mxu1 %v4008_v0  ;;  %3409 = vmatpush3.bf16.msra.mxu1 %v3709_v7 }
  0x8c   : > { %3410 = vmatprep.subr.bf16.mxu1 %v3710_v8 }
  0x8f   : > { %3411 = vmatpush3.bf16.msra.mxu1 %v3711_v9 }
  0x90   : > { %3412 = vmatprep.subr.bf16.mxu1 %v3712_v10 }
  0x92   : > { %3052 = vmatmul.mubr.msk.bf16.gmra.mrb[28].mxu1 %vm508_vm0, %v483_v55 }
  0x93   : > { %718 = vmatprep.mubr.bf16.mxu1 %v4008_v0  ;;  %3413 = vmatpush3.bf16.msra.mxu1 %v3713_v11 }
  0x94   : > { %3414 = vmatprep.subr.bf16.mxu1 %v3714_v12 }
  0x97   : > { %3415 = vmatpush3.bf16.msra.mxu1 %v3715_v13 }
  0x9a   : > { %3053 = vmatmul.mubr.msk.bf16.gmra.mrb[32].mxu1 %vm508_vm0, %v4180_v17  ;;  %v764_v17 = vand.u32 31, %v4234_v15 }
  0x9b   : > { %728 = vmatprep.mubr.bf16.mxu1 %v4008_v0 }
  0x9c   : > { %v4238_v19 = vcvt.s32.f32 %v764_v17 }
  0xa2   : > { %3054 = vmatmul.mubr.msk.bf16.gmra.mrb[36].mxu1 %vm508_vm0, %v4194_v30 }
  0xa3   : > { %738 = vmatprep.mubr.bf16.mxu1 %v4008_v0 }
  0xaa   : > { %3055 = vmatmul.mubr.msk.bf16.gmra.mrb[40].mxu1 %vm508_vm0, %v486_v45 }
  0xab   : > { %748 = vmatprep.mubr.bf16.mxu1 %v4008_v0 }
  0xb2   : > { %3056 = vmatmul.mubr.msk.bf16.gmra.mrb[44].mxu1 %vm508_vm0, %v487_v57 }
 0x12c   : > { %v567_v20 = vpop.f32.mrb[0].mxu0 }
 0x12d   : > { %vm772_vm1 = vcmp.eq.f32.partialorder %v4238_v19, %v567_v20  ;;  %v607_v21 = vpop.f32.mrb[0].mxu1  ;;  %v569_v22 = vpop.f32.mrb[1].mxu0 }
 0x12e   : > { %v609_v24 = vpop.f32.mrb[1].mxu1  ;;  %v571_v25 = vpop.f32.mrb[2].mxu0  ;;  %vm773_vm2 = vcmp.eq.f32.partialorder %v4241_v23, %v569_v22  ;;  %vm804_vm4 = vcmp.eq.f32.partialorder %v4238_v19, %v607_v21 }
 0x12f   : > { %vm776_vm3 = vcmp.eq.f32.partialorder %v4238_v19, %v571_v25  ;;  %v611_v26 = vpop.f32.mrb[2].mxu1  ;;  %v573_v27 = vpop.f32.mrb[3].mxu0  ;;  %vm805_vm10 = vcmp.eq.f32.partialorder %v4241_v23, %v609_v24 }
 0x130   : > { %vm3155_vm5 = vmpackc.low %vm776_vm3, %vm772_vm1  ;;  %vm808_vm6 = vcmp.eq.f32.partialorder %v4238_v19, %v611_v26  ;;  %vm777_vm7 = vcmp.eq.f32.partialorder %v4241_v23, %v573_v27  ;;  %v613_v28 = vpop.f32.mrb[3].mxu1 }
 0x131   : > { %vm4248_vm8 = vmpackc.low %vm808_vm6, %vm804_vm4  ;;  %vm809_vm9 = vcmp.eq.f32.partialorder %v4241_v23, %v613_v28 }
 0x132   : > { %vm3153_vm11 = vmpackc.low %vm777_vm7, %vm773_vm2 }
 0x133   : > { %vm4254_vm12 = vmpackc.low %vm809_vm9, %vm805_vm10  ;;  %3154 = vmatprep.mubr.msk.bf16.mxu0 %vm3153_vm11, %v4009_v31 }
 0x134   : > { %3156 = vmatmul.mubr.msk.bf16.vlgmr.msra.gmra.mrb[16].mxu0 %vm3155_vm5, %v4009_v31  ;;  %v577_v32 = vpop.f32.mrb[4].mxu0 }
 0x135   : > { %vm780_vm13 = vcmp.eq.f32.partialorder %v4238_v19, %v577_v32  ;;  %v617_v33 = vpop.f32.mrb[4].mxu1  ;;  %v579_v34 = vpop.f32.mrb[5].mxu0  ;;  %1629 = vmatpush1.bf16.msra.mxu0 %v3716_v40 }
 0x136   : > { %v619_v35 = vpop.f32.mrb[5].mxu1  ;;  %v581_v36 = vpop.f32.mrb[6].mxu0  ;;  %vm781_vm14 = vcmp.eq.f32.partialorder %v4241_v23, %v579_v34  ;;  %vm812_vm0 = vcmp.eq.f32.partialorder %v4238_v19, %v617_v33 }
 0x137   : > { %vm784_vm15 = vcmp.eq.f32.partialorder %v4238_v19, %v581_v36  ;;  %v621_v37 = vpop.f32.mrb[6].mxu1  ;;  %v583_v38 = vpop.f32.mrb[7].mxu0  ;;  %vm813_vm6 = vcmp.eq.f32.partialorder %v4241_v23, %v619_v35 }
 0x138   : > { %vm3159_vm1 = vmpackc.low %vm784_vm15, %vm780_vm13  ;;  %vm816_vm2 = vcmp.eq.f32.partialorder %v4238_v19, %v621_v37  ;;  %vm785_vm3 = vcmp.eq.f32.partialorder %v4241_v23, %v583_v38  ;;  %v623_v39 = vpop.f32.mrb[7].mxu1 }
 0x139   : > { %vm4266_vm4 = vmpackc.low %vm816_vm2, %vm812_vm0  ;;  %vm817_vm5 = vcmp.eq.f32.partialorder %v4241_v23, %v623_v39 }
 0x13a   : > { %vm3157_vm7 = vmpackc.low %vm785_vm3, %vm781_vm14 }
 0x13b   : > { %vm4272_vm9 = vmpackc.low %vm817_vm5, %vm813_vm6  ;;  %3158 = vmatprep.mubr.msk.bf16.mxu0 %vm3157_vm7, %v4009_v31 }
 0x13c   : > { %3160 = vmatmul.mubr.msk.bf16.gmra.mrb[20].mxu0 %vm3159_vm1, %v4009_v31  ;;  %v587_v42 = vpop.f32.mrb[8].mxu0 }
 0x13d   : > { %vm788_vm10 = vcmp.eq.f32.partialorder %v4238_v19, %v587_v42  ;;  %v627_v43 = vpop.f32.mrb[8].mxu1  ;;  %v589_v44 = vpop.f32.mrb[9].mxu0  ;;  %v3721_v42 = vld [vmem:[#allocation2 + $0x444] ss:$16 sps:$4 sm:$0xff]  }
 0x13e   : > { %v629_v45 = vpop.f32.mrb[9].mxu1  ;;  %v591_v46 = vpop.f32.mrb[10].mxu0  ;;  %vm789_vm11 = vcmp.eq.f32.partialorder %v4241_v23, %v589_v44  ;;  %vm820_vm14 = vcmp.eq.f32.partialorder %v4238_v19, %v627_v43  ;;  %v3719_v43 = vld [vmem:[#allocation2 + $0x440] ss:$16 sps:$4 sm:$0xff]   ;;  %1630 = vmatprep.subr.bf16.mxu0 %v3721_v42  ;;  %v3724_v44 = vld [vmem:[#allocation2 + $0x464] ss:$16 sps:$4 sm:$0xff]  }
 0x13f   : > { %vm792_vm13 = vcmp.eq.f32.partialorder %v4238_v19, %v591_v46  ;;  %v631_v47 = vpop.f32.mrb[10].mxu1  ;;  %v593_v48 = vpop.f32.mrb[11].mxu0  ;;  %vm821_vm5 = vcmp.eq.f32.partialorder %v4241_v23, %v629_v45  ;;  %1631 = vmatpush1.bf16.msra.mxu0 %v3719_v43  ;;  %v3722_v45 = vld [vmem:[#allocation2 + $0x460] ss:$16 sps:$4 sm:$0xff]   ;;  %v3727_v46 = vld [vmem:[#allocation2 + $0x484] ss:$16 sps:$4 sm:$0xff]  }
 0x140   : > { %vm3163_vm15 = vmpackc.low %vm792_vm13, %vm788_vm10  ;;  %vm824_vm0 = vcmp.eq.f32.partialorder %v4238_v19, %v631_v47  ;;  %vm793_vm1 = vcmp.eq.f32.partialorder %v4241_v23, %v593_v48  ;;  %v633_v49 = vpop.f32.mrb[11].mxu1  ;;  %1632 = vmatprep.subr.bf16.mxu0 %v3724_v44  ;;  %v3725_v47 = vld [vmem:[#allocation2 + $0x480] ss:$16 sps:$4 sm:$0xff]   ;;  %v3730_v48 = vld [vmem:[#allocation2 + $0x4a4] ss:$16 sps:$4 sm:$0xff]  }
 0x141   : > { %vm4284_vm2 = vmpackc.low %vm824_vm0, %vm820_vm14  ;;  %vm825_vm3 = vcmp.eq.f32.partialorder %v4241_v23, %v633_v49  ;;  %v3728_v49 = vld [vmem:[#allocation2 + $0x4a0] ss:$16 sps:$4 sm:$0xff]  }
 0x142   : > { %v5005_v50 = vsel %vm4284_vm2, 4294967295, %v5004_v50  ;;  %vm3161_vm6 = vmpackc.low %vm793_vm1, %vm789_vm11 }
 0x143   : > { %vm4290_vm7 = vmpackc.low %vm825_vm3, %vm821_vm5  ;;  %3162 = vmatprep.mubr.msk.bf16.mxu0 %vm3161_vm6, %v4009_v31  ;;  %1633 = vmatpush1.bf16.msra.mxu0 %v3722_v45 }
 0x144   : > { %v5007_v51 = vsel %vm4290_vm7, 4294967295, %v5006_v51  ;;  %3164 = vmatmul.mubr.msk.bf16.gmra.mrb[24].mxu0 %vm3163_vm15, %v4009_v31  ;;  %v597_v52 = vpop.f32.mrb[12].mxu0  ;;  %1634 = vmatprep.subr.bf16.mxu0 %v3727_v46 }
 0x145   : > { %vm796_vm10 = vcmp.eq.f32.partialorder %v4238_v19, %v597_v52  ;;  %v637_v54 = vpop.f32.mrb[12].mxu1  ;;  %v599_v55 = vpop.f32.mrb[13].mxu0  ;;  %v3734_v52 = vld [vmem:[#allocation2 + $0x4e0] ss:$16 sps:$4 sm:$0xff]  }
 0x146   : > { %v639_v57 = vpop.f32.mrb[13].mxu1  ;;  %v601_v58 = vpop.f32.mrb[14].mxu0  ;;  %vm797_vm11 = vcmp.eq.f32.partialorder %v4241_v23, %v599_v55  ;;  %vm828_vm14 = vcmp.eq.f32.partialorder %v4238_v19, %v637_v54 }
 0x147   : > { %vm800_vm13 = vcmp.eq.f32.partialorder %v4238_v19, %v601_v58  ;;  %v641_v59 = vpop.f32.mrb[14].mxu1  ;;  %v603_v60 = vpop.f32.mrb[15].mxu0  ;;  %vm829_vm6 = vcmp.eq.f32.partialorder %v4241_v23, %v639_v57  ;;  %1635 = vmatpush1.bf16.msra.mxu0 %v3725_v47 }
 0x148   : > { %vm3167_vm15 = vmpackc.low %vm800_vm13, %vm796_vm10  ;;  %vm832_vm0 = vcmp.eq.f32.partialorder %v4238_v19, %v641_v59  ;;  %vm801_vm1 = vcmp.eq.f32.partialorder %v4241_v23, %v603_v60  ;;  %v643_v61 = vpop.f32.mrb[15].mxu1  ;;  %1636 = vmatprep.subr.bf16.mxu0 %v3730_v48 }
 0x149   : > { %vm4304_vm3 = vmpackc.low %vm832_vm0, %vm828_vm14  ;;  %vm833_vm5 = vcmp.eq.f32.partialorder %v4241_v23, %v643_v61 }
 0x14a   : > { %vm3165_vm2 = vmpackc.low %vm801_vm1, %vm797_vm11 }
 0x14b   : > { %vm4310_vm7 = vmpackc.low %vm833_vm5, %vm829_vm6  ;;  %3166 = vmatprep.mubr.msk.bf16.mxu0 %vm3165_vm2, %v4009_v31  ;;  %1637 = vmatpush1.bf16.msra.mxu0 %v3728_v49 }
 0x14c   : > { %3168 = vmatmul.mubr.msk.bf16.gmra.mrb[28].mxu0 %vm3167_vm15, %v4009_v31 }
 0x14d   : > { %v680_v4 = vpop.f32.mrb[16].mxu1  ;;  %3170 = vmatprep.mubr.msk.bf16.mxu0 %vm4254_vm12, %v4009_v31 }
 0x14e   : > { %v682_v6 = vpop.f32.mrb[17].mxu1  ;;  %vm774_vm10 = vcmp.eq.f32.partialorder %v4316_v3, %v680_v4 }
 0x14f   : > { %v684_v7 = vpop.f32.mrb[18].mxu1  ;;  %vm775_vm2 = vcmp.eq.f32.partialorder %v4321_v5, %v682_v6 }
 0x150   : > { %vm778_vm11 = vcmp.eq.f32.partialorder %v4316_v3, %v684_v7  ;;  %v686_v8 = vpop.f32.mrb[19].mxu1 }
 0x151   : > { %vm3187_vm13 = vmpackc.low %vm778_vm11, %vm774_vm10  ;;  %vm779_vm14 = vcmp.eq.f32.partialorder %v4321_v5, %v686_v8 }
 0x152   : > { %vm3185_vm15 = vmpackc.low %vm779_vm14, %vm775_vm2 }
 0x153   : > { %3186 = vmatprep.mubr.msk.bf16.mxu1 %vm3185_vm15, %v4009_v31  ;;  %vm5013_vm15 = vnez %v5005_v50  ;;  %v3731_v50 = vld [vmem:[#allocation2 + $0x4c0] ss:$16 sps:$4 sm:$0xff]  }
 0x154   : > { %3172 = vmatmul.mubr.msk.bf16.gmra.mrb[32].mxu0 %vm4248_vm8, %v4009_v31  ;;  %3188 = vmatmul.mubr.msk.bf16.vlgmr.msra.gmra.mrb[48].mxu1 %vm3187_vm13, %v4009_v31 }
 0x155   : > { %v690_v9 = vpop.f32.mrb[20].mxu1  ;;  %3174 = vmatprep.mubr.msk.bf16.mxu0 %vm4272_vm9, %v4009_v31  ;;  %vm5012_vm9 = vnez %v5007_v51  ;;  %v3736_v51 = vld [vmem:[#allocation2 + $0x4e4] ss:$16 sps:$4 sm:$0xff]  }
 0x156   : > { %v692_v10 = vpop.f32.mrb[21].mxu1  ;;  %vm782_vm12 = vcmp.eq.f32.partialorder %v4316_v3, %v690_v9 }
 0x157   : > { %v694_v11 = vpop.f32.mrb[22].mxu1  ;;  %vm783_vm1 = vcmp.eq.f32.partialorder %v4321_v5, %v692_v10 }
 0x158   : > { %vm786_vm0 = vcmp.eq.f32.partialorder %v4316_v3, %v694_v11  ;;  %v696_v12 = vpop.f32.mrb[23].mxu1 }
 0x159   : > { %vm3191_vm5 = vmpackc.low %vm786_vm0, %vm782_vm12  ;;  %vm787_vm6 = vcmp.eq.f32.partialorder %v4321_v5, %v696_v12 }
 0x15a   : > { %vm3189_vm8 = vmpackc.low %vm787_vm6, %vm783_vm1 }
 0x15b   : > { %3190 = vmatprep.mubr.msk.bf16.mxu1 %vm3189_vm8, %v4009_v31 }
 0x15c   : > { %3176 = vmatmul.mubr.msk.bf16.gmra.mrb[36].mxu0 %vm4266_vm4, %v4009_v31  ;;  %3192 = vmatmul.mubr.msk.bf16.gmra.mrb[52].mxu1 %vm3191_vm5, %v4009_v31 }
 0x15d   : > { %v700_v13 = vpop.f32.mrb[24].mxu1  ;;  %3178 = vmatprep.mubr.msk.bf16.mxu0 %vm5012_vm9, %v4009_v31 }
 0x15e   : > { %vm790_vm10 = vcmp.eq.f32.partialorder %v4316_v3, %v700_v13  ;;  %v702_v16 = vpop.f32.mrb[25].mxu1 }
 0x15f   : > { %vm791_vm11 = vcmp.eq.f32.partialorder %v4321_v5, %v702_v16  ;;  %v704_v17 = vpop.f32.mrb[26].mxu1  ;;  %v4399_v16 = vld [vmem:[#allocation5] ss:$0 sm:$0xff] }
 0x160   : > { %vm794_vm2 = vcmp.eq.f32.partialorder %v4316_v3, %v704_v17  ;;  %v706_v18 = vpop.f32.mrb[27].mxu1 }
 0x161   : > { %vm3195_vm13 = vmpackc.low %vm794_vm2, %vm790_vm10  ;;  %vm795_vm14 = vcmp.eq.f32.partialorder %v4321_v5, %v706_v18 }
 0x162   : > { %vm3193_vm4 = vmpackc.low %vm795_vm14, %vm791_vm11 }
 0x163   : > { %3194 = vmatprep.mubr.msk.bf16.mxu1 %vm3193_vm4, %v4009_v31 }
 0x164   : > { %3180 = vmatmul.mubr.msk.bf16.gmra.mrb[40].mxu0 %vm5013_vm15, %v4009_v31  ;;  %3196 = vmatmul.mubr.msk.bf16.gmra.mrb[56].mxu1 %vm3195_vm13, %v4009_v31 }
 0x165   : > { %v710_v19 = vpop.f32.mrb[28].mxu1  ;;  %3182 = vmatprep.mubr.msk.bf16.mxu0 %vm4310_vm7, %v4009_v31 }
 0x166   : > { %vm798_vm12 = vcmp.eq.f32.partialorder %v4316_v3, %v710_v19  ;;  %v712_v20 = vpop.f32.mrb[29].mxu1 }
 0x167   : > { %vm799_vm0 = vcmp.eq.f32.partialorder %v4321_v5, %v712_v20  ;;  %v714_v21 = vpop.f32.mrb[30].mxu1 }
 0x168   : > { %vm802_vm1 = vcmp.eq.f32.partialorder %v4316_v3, %v714_v21  ;;  %v716_v22 = vpop.f32.mrb[31].mxu1 }
 0x169   : > { %vm3199_vm5 = vmpackc.low %vm802_vm1, %vm798_vm12  ;;  %vm803_vm6 = vcmp.eq.f32.partialorder %v4321_v5, %v716_v22 }
 0x16a   : > { %vm3197_vm8 = vmpackc.low %vm803_vm6, %vm799_vm0 }
 0x16b   : > { %3198 = vmatprep.mubr.msk.bf16.mxu1 %vm3197_vm8, %v4009_v31 }
 0x16c   : > { %3184 = vmatmul.mubr.msk.bf16.gmra.mrb[44].mxu0 %vm4304_vm3, %v4009_v31  ;;  %3200 = vmatmul.mubr.msk.bf16.gmra.mrb[60].mxu1 %vm3199_vm5, %v4009_v31 }
 0x16d   : > { %v720_v23 = vpop.f32.mrb[32].mxu1  ;;  %1660 = vmatprep.mubr.bf16.mxu0 %v4008_v0 }
 0x16e   : > { %vm806_vm7 = vcmp.eq.f32.partialorder %v4316_v3, %v720_v23  ;;  %v722_v24 = vpop.f32.mrb[33].mxu1 }
 0x16f   : > { %vm807_vm9 = vcmp.eq.f32.partialorder %v4321_v5, %v722_v24  ;;  %v724_v25 = vpop.f32.mrb[34].mxu1 }
 0x170   : > { %vm810_vm10 = vcmp.eq.f32.partialorder %v4316_v3, %v724_v25  ;;  %v726_v26 = vpop.f32.mrb[35].mxu1 }
 0x171   : > { %vm3203_vm11 = vmpackc.low %vm810_vm10, %vm806_vm7  ;;  %vm811_vm2 = vcmp.eq.f32.partialorder %v4321_v5, %v726_v26  ;;  %v3737_v26 = vld [vmem:[#allocation2 + $0x500] ss:$16 sps:$4 sm:$0xff]  }
 0x172   : > { %vm3201_vm13 = vmpackc.low %vm811_vm2, %vm807_vm9 }
 0x173   : > { %3202 = vmatprep.mubr.msk.bf16.mxu1 %vm3201_vm13, %v4009_v31 }
 0x174   : > { %3204 = vmatmul.mubr.msk.bf16.gmra.mrb[64].mxu1 %vm3203_vm11, %v4009_v31 }
 0x175   : > { %v730_v27 = vpop.f32.mrb[36].mxu1 }
 0x176   : > { %vm814_vm3 = vcmp.eq.f32.partialorder %v4316_v3, %v730_v27  ;;  %v732_v28 = vpop.f32.mrb[37].mxu1  ;;  %v3739_v27 = vld [vmem:[#allocation2 + $0x504] ss:$16 sps:$4 sm:$0xff]  }
 0x177   : > { %vm815_vm14 = vcmp.eq.f32.partialorder %v4321_v5, %v732_v28  ;;  %v734_v29 = vpop.f32.mrb[38].mxu1 }
 0x178   : > { %vm818_vm4 = vcmp.eq.f32.partialorder %v4316_v3, %v734_v29  ;;  %v736_v30 = vpop.f32.mrb[39].mxu1 }
 0x179   : > { %vm3207_vm15 = vmpackc.low %vm818_vm4, %vm814_vm3  ;;  %vm819_vm12 = vcmp.eq.f32.partialorder %v4321_v5, %v736_v30 }
 0x17a   : > { %vm3205_vm0 = vmpackc.low %vm819_vm12, %vm815_vm14 }
 0x17b   : > { %3206 = vmatprep.mubr.msk.bf16.mxu1 %vm3205_vm0, %v4009_v31 }
 0x17c   : > { %3208 = vmatmul.mubr.msk.bf16.gmra.mrb[68].mxu1 %vm3207_vm15, %v4009_v31 }
 0x17d   : > { %v740_v32 = vpop.f32.mrb[40].mxu1 }
 0x17e   : > { %vm822_vm1 = vcmp.eq.f32.partialorder %v4316_v3, %v740_v32  ;;  %v742_v33 = vpop.f32.mrb[41].mxu1 }
 0x17f   : > { %vm823_vm5 = vcmp.eq.f32.partialorder %v4321_v5, %v742_v33  ;;  %v744_v34 = vpop.f32.mrb[42].mxu1 }
 0x180   : > { %vm826_vm6 = vcmp.eq.f32.partialorder %v4316_v3, %v744_v34  ;;  %v746_v35 = vpop.f32.mrb[43].mxu1 }
 0x181   : > { %vm3211_vm8 = vmpackc.low %vm826_vm6, %vm822_vm1  ;;  %vm827_vm7 = vcmp.eq.f32.partialorder %v4321_v5, %v746_v35 }
 0x182   : > { %vm3209_vm9 = vmpackc.low %vm827_vm7, %vm823_vm5 }
 0x183   : > { %3210 = vmatprep.mubr.msk.bf16.mxu1 %vm3209_vm9, %v4009_v31 }
 0x184   : > { %3212 = vmatmul.mubr.msk.bf16.gmra.mrb[72].mxu1 %vm3211_vm8, %v4009_v31 }
 0x185   : > { %v750_v36 = vpop.f32.mrb[44].mxu1 }
 0x186   : > { %vm830_vm10 = vcmp.eq.f32.partialorder %v4316_v3, %v750_v36  ;;  %v752_v37 = vpop.f32.mrb[45].mxu1 }
 0x187   : > { %vm831_vm11 = vcmp.eq.f32.partialorder %v4321_v5, %v752_v37  ;;  %v754_v38 = vpop.f32.mrb[46].mxu1 }
 0x188   : > { %vm834_vm2 = vcmp.eq.f32.partialorder %v4316_v3, %v754_v38  ;;  %v756_v39 = vpop.f32.mrb[47].mxu1 }
 0x189   : > { %vm3215_vm13 = vmpackc.low %vm834_vm2, %vm830_vm10  ;;  %vm835_vm3 = vcmp.eq.f32.partialorder %v4321_v5, %v756_v39 }
 0x18a   : > { %vm3213_vm14 = vmpackc.low %vm835_vm3, %vm831_vm11 }
 0x18b   : > { %3214 = vmatprep.mubr.msk.bf16.mxu1 %vm3213_vm14, %v4009_v31 }
 0x18c   : > { %3216 = vmatmul.mubr.msk.bf16.gmra.mrb[76].mxu1 %vm3215_vm13, %v4009_v31  ;;  %v3733_v31 = vld [vmem:[#allocation2 + $0x4c4] ss:$16 sps:$4 sm:$0xff]  }
 0x18d   : > { %1638 = vmatprep.subr.bf16.mxu0 %v3733_v31 }
 0x18e   : > { %1639 = vmatpush1.bf16.msra.mxu0 %v3731_v50 }
 0x18f   : > { %1640 = vmatprep.subr.bf16.mxu0 %v3736_v51 }
 0x192   : > { %1641 = vmatpush1.bf16.msra.mxu0 %v3734_v52 }
 0x193   : > { %1642 = vmatprep.subr.bf16.mxu0 %v3739_v27 }
 0x196   : > { %1643 = vmatpush1.bf16.msra.mxu0 %v3737_v26 }
 0x207   : > { %v3352_v53 = vpop.f32.mrb[16].mxu0 }
 0x208   : > { %v3353_v54 = vpop.f32.mrb[17].mxu0 }
 0x209   : > { %v3354_v55 = vadd.f32 %v3353_v54, %v3352_v53  ;;  %v3355_v56 = vpop.f32.mrb[18].mxu0 }
 0x20a   : > { %v3356_v57 = vpop.f32.mrb[19].mxu0 }
 0x20b   : > { %v3357_v58 = vadd.f32 %v3356_v57, %v3355_v56  ;;  %v1223_v21 = vadd.f32 %v3354_v55, %v4399_v16 }
 0x20d   : > { %v1226_v30 = vadd.f32 %v3357_v58, %v4399_v16 }
 0x20f   : > { %v3358_v59 = vpop.f32.mrb[20].mxu0 }
 0x210   : > { %v3359_v60 = vpop.f32.mrb[21].mxu0 }
 0x211   : > { %v3360_v61 = vadd.f32 %v3359_v60, %v3358_v59  ;;  %v3361_v62 = vpop.f32.mrb[22].mxu0 }
 0x212   : > { %v3362_v63 = vpop.f32.mrb[23].mxu0 }
 0x213   : > { %v3363_v1 = vadd.f32 %v3362_v63, %v3361_v62  ;;  %v1231_v42 = vadd.f32 %v3360_v61, %v4399_v16 }
 0x215   : > { %v1234_v31 = vadd.f32 %v3363_v1, %v4399_v16 }
 0x217   : > { %v3364_v2 = vpop.f32.mrb[24].mxu0 }
 0x218   : > { %v3365_v3 = vpop.f32.mrb[25].mxu0 }
 0x219   : > { %v3366_v4 = vadd.f32 %v3365_v3, %v3364_v2  ;;  %v3367_v5 = vpop.f32.mrb[26].mxu0 }
 0x21a   : > { %v3368_v6 = vpop.f32.mrb[27].mxu0 }
 0x21b   : > { %v4393_v7 = vadd.f32 %v3368_v6, %v3367_v5  ;;  %v1239_v60 = vadd.f32 %v3366_v4, %v4399_v16 }
 0x21d   : > { %v1242_v6 = vadd.f32 %v4393_v7, %v4399_v16 }
 0x21f   : > { %v3370_v8 = vpop.f32.mrb[28].mxu0 }
 0x220   : > { %v3371_v9 = vpop.f32.mrb[29].mxu0 }
 0x221   : > { %v4395_v10 = vadd.f32 %v3371_v9, %v3370_v8  ;;  %v3373_v11 = vpop.f32.mrb[30].mxu0 }
 0x222   : > { %v3374_v12 = vpop.f32.mrb[31].mxu0 }
 0x223   : > { %v4397_v13 = vadd.f32 %v3374_v12, %v3373_v11  ;;  %v1247_v7 = vadd.f32 %v4395_v10, %v4399_v16 }
 0x227   : > { %v3376_v17 = vpop.f32.mrb[32].mxu0  ;;  %v3416_v18 = vpop.f32.mrb[48].mxu1 }
 0x228   : > { %v3377_v19 = vpop.f32.mrb[33].mxu0  ;;  %v3417_v20 = vpop.f32.mrb[49].mxu1 }
 0x229   : > { %v4402_v22 = vadd.f32 %v3377_v19, %v3376_v17  ;;  %v3418_v23 = vadd.f32 %v3417_v20, %v3416_v18  ;;  %v3379_v24 = vpop.f32.mrb[34].mxu0  ;;  %v3419_v25 = vpop.f32.mrb[50].mxu1 }
 0x22a   : > { %v3380_v28 = vpop.f32.mrb[35].mxu0  ;;  %v3420_v29 = vpop.f32.mrb[51].mxu1 }
 0x22b   : > { %v4405_v32 = vadd.f32 %v3418_v23, %v1223_v21  ;;  %v4407_v33 = vadd.f32 %v3380_v28, %v3379_v24  ;;  %v3421_v34 = vadd.f32 %v3420_v29, %v3419_v25 }
 0x22d   : > { %v4409_v35 = vadd.f32 %v3421_v34, %v1226_v30  ;;  %v1382_v36 = vmax.f32 %v4405_v32, 0.0  ;;  %v1250_v30 = vadd.f32 %v4397_v13, %v4399_v16 }
 0x22f   : > { %v1383_v37 = vmax.f32 %v4409_v35, 0.0  ;;  %v3382_v38 = vpop.f32.mrb[36].mxu0  ;;  %v3422_v39 = vpop.f32.mrb[52].mxu1 }
 0x230   : > { %v3383_v40 = vpop.f32.mrb[37].mxu0  ;;  %v3423_v41 = vpop.f32.mrb[53].mxu1 }
 0x231   : > { %v4414_v43 = vadd.f32 %v3383_v40, %v3382_v38  ;;  %v3424_v44 = vadd.f32 %v3423_v41, %v3422_v39  ;;  %v3385_v45 = vpop.f32.mrb[38].mxu0  ;;  %v3425_v46 = vpop.f32.mrb[54].mxu1  ;;  %v3598_v47 = vpack.i.bf16 %v1383_v37, %v1382_v36 }
 0x232   : > { %v3386_v48 = vpop.f32.mrb[39].mxu0  ;;  %v3426_v49 = vpop.f32.mrb[55].mxu1 }
 0x233   : > { %v4421_v50 = vadd.f32 %v3424_v44, %v1231_v42  ;;  %v4423_v51 = vadd.f32 %v3386_v48, %v3385_v45  ;;  %v3427_v52 = vadd.f32 %v3426_v49, %v3425_v46  ;;  %3599 = vrot.lane.b32.xlu0 %v3598_v47, %s4010_s23  ;;  %v1255_v45 = vadd.f32 %v4402_v22, %v4399_v16 }
 0x234   : > { %v1258_v49 = vadd.f32 %v4407_v33, %v4399_v16 }
 0x235   : > { %v4426_v53 = vadd.f32 %v3427_v52, %v1234_v31  ;;  %v1384_v54 = vmax.f32 %v4421_v50, 0.0 }
 0x237   : > { %v1385_v55 = vmax.f32 %v4426_v53, 0.0  ;;  %v3428_v56 = vpop.f32.mrb[56].mxu1  ;;  %3604 = vrot.lane.b32.xlu0 %v3598_v47, %s4011_s28  ;;  %v3388_v57 = vpop.f32.mrb[40].mxu0 }
 0x238   : > { %v3389_v58 = vpop.f32.mrb[41].mxu0  ;;  %v3429_v59 = vpop.f32.mrb[57].mxu1 }
 0x239   : > { %v4432_v61 = vadd.f32 %v3389_v58, %v3388_v57  ;;  %v3430_v62 = vadd.f32 %v3429_v59, %v3428_v56  ;;  %v3391_v63 = vpop.f32.mrb[42].mxu0  ;;  %v3431_v1 = vpop.f32.mrb[58].mxu1  ;;  %v3608_v2 = vpack.i.bf16 %v1385_v55, %v1384_v54 }
 0x23a   : > { %v3392_v3 = vpop.f32.mrb[43].mxu0  ;;  %v3432_v5 = vpop.f32.mrb[59].mxu1 }
 0x23b   : > { %v4440_v8 = vadd.f32 %v3430_v62, %v1239_v60  ;;  %v4442_v9 = vadd.f32 %v3392_v3, %v3391_v63  ;;  %v3433_v4 = vadd.f32 %v3432_v5, %v3431_v1  ;;  %3609 = vrot.lane.b32.xlu1 %v3608_v2, %s4010_s23  ;;  %v1263_v60 = vadd.f32 %v4414_v43, %v4399_v16 }
 0x23d   : > { %v4445_v11 = vadd.f32 %v3433_v4, %v1242_v6  ;;  %v1386_v12 = vmax.f32 %v4440_v8, 0.0 }
 0x23f   : > { %v1387_v17 = vmax.f32 %v4445_v11, 0.0  ;;  %v3434_v18 = vpop.f32.mrb[60].mxu1  ;;  %3614 = vrot.lane.b32.xlu1 %v3608_v2, %s4011_s28  ;;  %v3394_v19 = vpop.f32.mrb[44].mxu0  ;;  %v1266_v2 = vadd.f32 %v4423_v51, %v4399_v16 }
 0x240   : > { %v3395_v20 = vpop.f32.mrb[45].mxu0  ;;  %v3435_v21 = vpop.f32.mrb[61].mxu1 }
 0x241   : > { %v4452_v23 = vadd.f32 %v3395_v20, %v3394_v19  ;;  %v3436_v24 = vadd.f32 %v3435_v21, %v3434_v18  ;;  %v3397_v25 = vpop.f32.mrb[46].mxu0  ;;  %v3437_v26 = vpop.f32.mrb[62].mxu1  ;;  %v3623_v27 = vpack.i.bf16 %v1387_v17, %v1386_v12 }
 0x242   : > { %v3398_v28 = vpop.f32.mrb[47].mxu0  ;;  %v3438_v29 = vpop.f32.mrb[63].mxu1 }
 0x243   : > { %v4460_v34 = vadd.f32 %v3436_v24, %v1247_v7  ;;  %v3399_v10 = vadd.f32 %v3398_v28, %v3397_v25  ;;  %v3439_v38 = vadd.f32 %v3438_v29, %v3437_v26  ;;  %3624 = vrot.lane.b32.xlu1 %v3623_v27, %s4011_s28  ;;  %3619 = vrot.lane.b32.xlu0 %v3623_v27, %s4010_s23 }
 0x244   : > { %v1271_v7 = vadd.f32 %v4432_v61, %v4399_v16  ;;  %v1274_v25 = vadd.f32 %v4442_v9, %v4399_v16 }
 0x245   : > { %v4464_v39 = vadd.f32 %v3439_v38, %v1250_v30  ;;  %v1388_v40 = vmax.f32 %v4460_v34, 0.0 }
 0x247   : > { %v1389_v41 = vmax.f32 %v4464_v39, 0.0  ;;  %v3440_v42 = vpop.f32.mrb[64].mxu1 }
 0x248   : > { %v3441_v44 = vpop.f32.mrb[65].mxu1 }
 0x249   : > { %v3442_v13 = vadd.f32 %v3441_v44, %v3440_v42  ;;  %v3443_v46 = vpop.f32.mrb[66].mxu1  ;;  %v3633_v47 = vpack.i.bf16 %v1389_v41, %v1388_v40  ;;  %v1279_v42 = vadd.f32 %v4452_v23, %v4399_v16 }
 0x24a   : > { %v3444_v48 = vpop.f32.mrb[67].mxu1 }
 0x24b   : > { %v4476_v31 = vadd.f32 %v3442_v13, %v1255_v45  ;;  %v3445_v52 = vadd.f32 %v3444_v48, %v3443_v46  ;;  %3634 = vrot.lane.b32.xlu1 %v3633_v47, %s4011_s28  ;;  %3629 = vrot.lane.b32.xlu0 %v3633_v47, %s4010_s23  ;;  %v1282_v46 = vadd.f32 %v3399_v10, %v4399_v16  ;;  %v3741_v16 = vld [vmem:[#allocation2 + $0x520] ss:$16 sps:$4 sm:$0xff]  }
 0x24c   : > { %v3742_v10 = vld [vmem:[#allocation2 + $0x640] ss:$16 sps:$4 sm:$0xff]  }
 0x24d   : > { %v4480_v56 = vadd.f32 %v3445_v52, %v1258_v49  ;;  %v1390_v22 = vmax.f32 %v4476_v31, 0.0 }
 0x24f   : > { %v1391_v57 = vmax.f32 %v4480_v56, 0.0  ;;  %v3446_v58 = vpop.f32.mrb[68].mxu1 }
 0x250   : > { %v3447_v59 = vpop.f32.mrb[69].mxu1 }
 0x251   : > { %v3448_v62 = vadd.f32 %v3447_v59, %v3446_v58  ;;  %v3449_v33 = vpop.f32.mrb[70].mxu1  ;;  %v3643_v63 = vpack.i.bf16 %v1391_v57, %v1390_v22  ;;  %v3740_v59 = vld [vmem:[#allocation2 + $0x620] ss:$16 sps:$4 sm:$0xff]  }
 0x252   : > { %v3450_v1 = vpop.f32.mrb[71].mxu1  ;;  %3464 = vmatprep.subr.bf16.mxu1 %v3740_v59 }
 0x253   : > { %v4492_v3 = vadd.f32 %v3448_v62, %v1263_v60  ;;  %v3451_v5 = vadd.f32 %v3450_v1, %v3449_v33  ;;  %3644 = vrot.lane.b32.xlu1 %v3643_v63, %s4011_s28  ;;  %3639 = vrot.lane.b32.xlu0 %v3643_v63, %s4010_s23  ;;  %v3743_v60 = vld [vmem:[#allocation2 + $0x540] ss:$16 sps:$4 sm:$0xff]  }
 0x254   : > { %3465 = vmatpush3.bf16.msra.mxu1 %v3741_v16  ;;  %v3744_v62 = vld [vmem:[#allocation2 + $0x660] ss:$16 sps:$4 sm:$0xff]  }
 0x255   : > { %v4496_v6 = vadd.f32 %v3451_v5, %v1266_v2  ;;  %v1392_v43 = vmax.f32 %v4492_v3, 0.0  ;;  %3466 = vmatprep.subr.bf16.mxu1 %v3742_v10  ;;  %v3745_v33 = vld [vmem:[#allocation2 + $0x560] ss:$16 sps:$4 sm:$0xff]  }
 0x256   : > { %v3746_v63 = vld [vmem:[#allocation2 + $0x680] ss:$16 sps:$4 sm:$0xff]  }
 0x257   : > { %v1393_v4 = vmax.f32 %v4496_v6, 0.0  ;;  %v3452_v18 = vpop.f32.mrb[72].mxu1  ;;  %v3747_v1 = vld [vmem:[#allocation2 + $0x580] ss:$16 sps:$4 sm:$0xff]  }
 0x258   : > { %v3453_v19 = vpop.f32.mrb[73].mxu1  ;;  %3467 = vmatpush3.bf16.msra.mxu1 %v3743_v60  ;;  %v3748_v2 = vld [vmem:[#allocation2 + $0x6a0] ss:$16 sps:$4 sm:$0xff]  }
 0x259   : > { %v3454_v20 = vadd.f32 %v3453_v19, %v3452_v18  ;;  %v3455_v51 = vpop.f32.mrb[74].mxu1  ;;  %v3653_v21 = vpack.i.bf16 %v1393_v4, %v1392_v43  ;;  %3468 = vmatprep.subr.bf16.mxu1 %v3744_v62  ;;  %v3749_v5 = vld [vmem:[#allocation2 + $0x5a0] ss:$16 sps:$4 sm:$0xff]  }
 0x25a   : > { %v3456_v24 = vpop.f32.mrb[75].mxu1  ;;  %v3750_v18 = vld [vmem:[#allocation2 + $0x6c0] ss:$16 sps:$4 sm:$0xff]  }
 0x25b   : > { %v4508_v26 = vadd.f32 %v3454_v20, %v1271_v7  ;;  %v3457_v27 = vadd.f32 %v3456_v24, %v3455_v51  ;;  %3654 = vrot.lane.b32.xlu1 %v3653_v21, %s4011_s28  ;;  %3649 = vrot.lane.b32.xlu0 %v3653_v21, %s4010_s23  ;;  %v3751_v19 = vld [vmem:[#allocation2 + $0x5c0] ss:$16 sps:$4 sm:$0xff]   ;;  %v1398_v51 = vand.u32 15, %v4234_v15  ;;  %v3761_v21 = vld [vmem:[#allocation2 + $0x744] ss:$16 sps:$4 sm:$0xff]  }
 0x25c   : > { %3469 = vmatpush3.bf16.msra.mxu1 %v3745_v33  ;;  %v3752_v7 = vld [vmem:[#allocation2 + $0x6e0] ss:$16 sps:$4 sm:$0xff]  }
 0x25d   : > { %v4512_v28 = vadd.f32 %v3457_v27, %v1274_v25  ;;  %v1394_v61 = vmax.f32 %v4508_v26, 0.0  ;;  %3470 = vmatprep.subr.bf16.mxu1 %v3746_v63  ;;  %v3753_v20 = vld [vmem:[#allocation2 + $0x5e0] ss:$16 sps:$4 sm:$0xff]   ;;  %vm4538_vm4 = vcmp.ge.s32.totalorder %v1398_v51, 1  ;;  %vm4546_vm15 = vcmp.lt.s32.totalorder %v1398_v51, 15 }
 0x25f   : > { %v1395_v29 = vmax.f32 %v4512_v28, 0.0  ;;  %v3458_v30 = vpop.f32.mrb[76].mxu1 }
 0x260   : > { %v3459_v38 = vpop.f32.mrb[77].mxu1  ;;  %3471 = vmatpush3.bf16.msra.mxu1 %v3747_v1 }
 0x261   : > { %v3460_v44 = vadd.f32 %v3459_v38, %v3458_v30  ;;  %v3461_v9 = vpop.f32.mrb[78].mxu1  ;;  %v3663_v45 = vpack.i.bf16 %v1395_v29, %v1394_v61  ;;  %3472 = vmatprep.subr.bf16.mxu1 %v3748_v2 }
 0x262   : > { %v3462_v13 = vpop.f32.mrb[79].mxu1 }
 0x263   : > { %v4523_v47 = vadd.f32 %v3460_v44, %v1279_v42  ;;  %v3463_v48 = vadd.f32 %v3462_v13, %v3461_v9  ;;  %3664 = vrot.lane.b32.xlu1 %v3663_v45, %s4011_s28  ;;  %3659 = vrot.lane.b32.xlu0 %v3663_v45, %s4010_s23  ;;  %v3764_v42 = vld [vmem:[#allocation2 + $0x764] ss:$16 sps:$4 sm:$0xff]  }
 0x264   : > { %3473 = vmatpush3.bf16.msra.mxu1 %v3749_v5 }
 0x265   : > { %v4527_v49 = vadd.f32 %v3463_v48, %v1282_v46  ;;  %v1396_v23 = vmax.f32 %v4523_v47, 0.0  ;;  %3474 = vmatprep.subr.bf16.mxu1 %v3750_v18  ;;  %v3756_v47 = vld [vmem:[#allocation2 + $0x720] ss:$16 sps:$4 sm:$0xff]  }
 0x267   : > { %v1397_v52 = vmax.f32 %v4527_v49, 0.0  ;;  %v3754_v49 = vld [vmem:[#allocation2 + $0x700] ss:$16 sps:$4 sm:$0xff]  }
 0x268   : > { %3475 = vmatpush3.bf16.msra.mxu1 %v3751_v19 }
 0x269   : > { %v3673_v58 = vpack.i.bf16 %v1397_v52, %v1396_v23  ;;  %3476 = vmatprep.subr.bf16.mxu1 %v3752_v7 }
 0x26b   : > { %3674 = vrot.lane.b32.xlu1 %v3673_v58, %s4011_s28  ;;  %3669 = vrot.lane.b32.xlu0 %v3673_v58, %s4010_s23 }
 0x26c   : > { %3477 = vmatpush3.bf16.msra.mxu1 %v3753_v20 }
 0x26d   : > { %3478 = vmatprep.subr.bf16.mxu1 %v3754_v49 }
 0x2a5   : > { %v3600_v24 = vpop.permute.xlu0 %3599 }
 0x2a6   : > { %v3602_v25 = vunpack.i.h.bf16 %v3600_v24  ;;  %v3601_v27 = vunpack.i.l.bf16 %v3600_v24 }
 0x2a8   : > { %v1433_v30 = vsel %vm4538_vm4, %v3602_v25, 0.0  ;;  %v1432_v38 = vsel %vm4538_vm4, %v3601_v27, 0.0 }
 0x2a9   : > { %v3605_v44 = vpop.permute.xlu0 %3604  ;;  %v1449_v45 = vmax.f32 %v1383_v37, %v1433_v30  ;;  %v1448_v13 = vmax.f32 %v1382_v36, %v1432_v38 }
 0x2aa   : > { %v3607_v9 = vunpack.i.h.bf16 %v3605_v44  ;;  %v3606_v15 = vunpack.i.l.bf16 %v3605_v44 }
 0x2ac   : > { %v1498_v46 = vsel %vm4546_vm15, %v3607_v9, 0.0  ;;  %v1497_v48 = vsel %vm4546_vm15, %v3606_v15, 0.0 }
 0x2ad   : > { %v1513_v58 = vmax.f32 %v1448_v13, %v1497_v48  ;;  %v1514_v59 = vmax.f32 %v1449_v45, %v1498_v46  ;;  %v3610_v16 = vpop.permute.xlu1 %3609 }
 0x2ae   : > { %v3612_v10 = vunpack.i.h.bf16 %v3610_v16  ;;  %v3611_v60 = vunpack.i.l.bf16 %v3610_v16 }
 0x2af   : > { %v1529_v62 = vpack.c.bf16 %v1514_v59, %v1513_v58 }
 0x2b0   : > { %v1435_v33 = vsel %vm4538_vm4, %v3612_v10, 0.0  ;;  %v1434_v35 = vsel %vm4538_vm4, %v3611_v60, 0.0 }
 0x2b1   : > { %v3615_v32 = vpop.permute.xlu1 %3614  ;;  %1661 = vmatmul.mubr.bf16.vlgmr.msra.gmra.mrb[48].mxu0 %v1529_v62  ;;  %v1451_v63 = vmax.f32 %v1385_v55, %v1435_v33  ;;  %v1450_v1 = vmax.f32 %v1384_v54, %v1434_v35 }
 0x2b2   : > { %v3617_v36 = vunpack.i.h.bf16 %v3615_v32  ;;  %v3616_v37 = vunpack.i.l.bf16 %v3615_v32  ;;  %1670 = vmatprep.mubr.bf16.mxu0 %v4008_v0 }
 0x2b4   : > { %v1500_v2 = vsel %vm4546_vm15, %v3617_v36, 0.0  ;;  %v1499_v5 = vsel %vm4546_vm15, %v3616_v37, 0.0 }
 0x2b5   : > { %v1515_v18 = vmax.f32 %v1450_v1, %v1499_v5  ;;  %v1516_v19 = vmax.f32 %v1451_v63, %v1500_v2  ;;  %v3625_v7 = vpop.permute.xlu1 %3624  ;;  %v3620_v51 = vpop.permute.xlu0 %3619 }
 0x2b6   : > { %v3627_v20 = vunpack.i.h.bf16 %v3625_v7  ;;  %v3626_v24 = vunpack.i.l.bf16 %v3625_v7  ;;  %v3622_v25 = vunpack.i.h.bf16 %v3620_v51  ;;  %v3621_v27 = vunpack.i.l.bf16 %v3620_v51 }
 0x2b7   : > { %v1530_v30 = vpack.c.bf16 %v1516_v19, %v1515_v18 }
 0x2b8   : > { %v1437_v53 = vsel %vm4538_vm4, %v3622_v25, 0.0  ;;  %v1436_v50 = vsel %vm4538_vm4, %v3621_v27, 0.0  ;;  %v1502_v38 = vsel %vm4546_vm15, %v3627_v20, 0.0  ;;  %v1501_v44 = vsel %vm4546_vm15, %v3626_v24, 0.0 }
 0x2b9   : > { %1671 = vmatmul.mubr.bf16.gmra.mrb[52].mxu0 %v1530_v30  ;;  %v1453_v54 = vmax.f32 %v1387_v17, %v1437_v53  ;;  %v1452_v55 = vmax.f32 %v1386_v12, %v1436_v50 }
 0x2ba   : > { %1680 = vmatprep.mubr.bf16.mxu0 %v4008_v0 }
 0x2bb   : > { %v1517_v9 = vmax.f32 %v1452_v55, %v1501_v44  ;;  %v1518_v15 = vmax.f32 %v1453_v54, %v1502_v38 }
 0x2bd   : > { %v3635_v45 = vpop.permute.xlu1 %3634  ;;  %v3630_v13 = vpop.permute.xlu0 %3629  ;;  %v1531_v17 = vpack.c.bf16 %v1518_v15, %v1517_v9 }
 0x2be   : > { %v3637_v46 = vunpack.i.h.bf16 %v3635_v45  ;;  %v3636_v48 = vunpack.i.l.bf16 %v3635_v45  ;;  %v3632_v58 = vunpack.i.h.bf16 %v3630_v13  ;;  %v3631_v11 = vunpack.i.l.bf16 %v3630_v13 }
 0x2c0   : > { %v1439_v8 = vsel %vm4538_vm4, %v3632_v58, 0.0  ;;  %v1438_v12 = vsel %vm4538_vm4, %v3631_v11, 0.0  ;;  %v1504_v10 = vsel %vm4546_vm15, %v3637_v46, 0.0  ;;  %v1503_v60 = vsel %vm4546_vm15, %v3636_v48, 0.0 }
 0x2c1   : > { %v1455_v59 = vmax.f32 %v1389_v41, %v1439_v8  ;;  %v1454_v16 = vmax.f32 %v1388_v40, %v1438_v12  ;;  %1681 = vmatmul.mubr.bf16.gmra.mrb[56].mxu0 %v1531_v17 }
 0x2c2   : > { %1690 = vmatprep.mubr.bf16.mxu0 %v4008_v0 }
 0x2c3   : > { %v1519_v62 = vmax.f32 %v1454_v16, %v1503_v60  ;;  %v1520_v33 = vmax.f32 %v1455_v59, %v1504_v10 }
 0x2c5   : > { %v3645_v35 = vpop.permute.xlu1 %3644  ;;  %v3640_v32 = vpop.permute.xlu0 %3639  ;;  %v1532_v63 = vpack.c.bf16 %v1520_v33, %v1519_v62 }
 0x2c6   : > { %v3647_v36 = vunpack.i.h.bf16 %v3645_v35  ;;  %v3646_v37 = vunpack.i.l.bf16 %v3645_v35  ;;  %v3642_v39 = vunpack.i.h.bf16 %v3640_v32  ;;  %v3641_v41 = vunpack.i.l.bf16 %v3640_v32 }
 0x2c8   : > { %v1441_v34 = vsel %vm4538_vm4, %v3642_v39, 0.0  ;;  %v1440_v40 = vsel %vm4538_vm4, %v3641_v41, 0.0  ;;  %v1506_v5 = vsel %vm4546_vm15, %v3647_v36, 0.0  ;;  %v1505_v18 = vsel %vm4546_vm15, %v3646_v37, 0.0  ;;  %v3759_v41 = vld [vmem:[#allocation2 + $0x740] ss:$16 sps:$4 sm:$0xff]  }
 0x2c9   : > { %v1457_v1 = vmax.f32 %v1391_v57, %v1441_v34  ;;  %v1456_v2 = vmax.f32 %v1390_v22, %v1440_v40  ;;  %1691 = vmatmul.mubr.bf16.gmra.mrb[60].mxu0 %v1532_v63  ;;  %v3762_v63 = vld [vmem:[#allocation2 + $0x760] ss:$16 sps:$4 sm:$0xff]   ;;  %v3767_v34 = vld [vmem:[#allocation2 + $0x784] ss:$16 sps:$4 sm:$0xff]  }
 0x2ca   : > { %1700 = vmatprep.mubr.bf16.mxu0 %v4008_v0  ;;  %v3765_v40 = vld [vmem:[#allocation2 + $0x780] ss:$16 sps:$4 sm:$0xff]  }
 0x2cb   : > { %v1521_v19 = vmax.f32 %v1456_v2, %v1505_v18  ;;  %v1522_v7 = vmax.f32 %v1457_v1, %v1506_v5  ;;  %v3770_v1 = vld [vmem:[#allocation2 + $0x7a4] ss:$16 sps:$4 sm:$0xff]   ;;  %v3768_v2 = vld [vmem:[#allocation2 + $0x7a0] ss:$16 sps:$4 sm:$0xff]  }
 0x2cc   : > { %v3773_v5 = vld [vmem:[#allocation2 + $0x7c4] ss:$16 sps:$4 sm:$0xff]   ;;  %v3771_v18 = vld [vmem:[#allocation2 + $0x7c0] ss:$16 sps:$4 sm:$0xff]  }
 0x2cd   : > { %v3655_v20 = vpop.permute.xlu1 %3654  ;;  %v3650_v51 = vpop.permute.xlu0 %3649  ;;  %v1533_v27 = vpack.c.bf16 %v1522_v7, %v1521_v19  ;;  %v3776_v19 = vld [vmem:[#allocation2 + $0x7e4] ss:$16 sps:$4 sm:$0xff]   ;;  %v3774_v7 = vld [vmem:[#allocation2 + $0x7e0] ss:$16 sps:$4 sm:$0xff]  }
 0x2ce   : > { %v3657_v24 = vunpack.i.h.bf16 %v3655_v20  ;;  %v3656_v25 = vunpack.i.l.bf16 %v3655_v20  ;;  %v3652_v56 = vunpack.i.h.bf16 %v3650_v51  ;;  %v3651_v57 = vunpack.i.l.bf16 %v3650_v51 }
 0x2cf   : > { %v4651_v20 = vshrl.u32 %v759_v14, 7 }
 0x2d0   : > { %v1443_v31 = vsel %vm4538_vm4, %v3652_v56, 0.0  ;;  %v1442_v22 = vsel %vm4538_vm4, %v3651_v57, 0.0  ;;  %v1508_v50 = vsel %vm4546_vm15, %v3657_v24, 0.0  ;;  %v1507_v54 = vsel %vm4546_vm15, %v3656_v25, 0.0 }
 0x2d1   : > { %v1459_v30 = vmax.f32 %v1393_v4, %v1443_v31  ;;  %v1458_v53 = vmax.f32 %v1392_v43, %v1442_v22  ;;  %1701 = vmatmul.mubr.bf16.gmra.mrb[64].mxu0 %v1533_v27  ;;  %v4654_v51 = vsub.s32 0, %v4651_v20  ;;  %v442_v24 = vld [vmem:[#allocation5 + $0x1] ss:$8 sm:$0x3]  ;;  %v4657_v25 = vsub.s32 1, %v4651_v20 }
 0x2d2   : > { %1710 = vmatprep.mubr.bf16.mxu0 %v4008_v0 }
 0x2d3   : > { %v1523_v55 = vmax.f32 %v1458_v53, %v1507_v54  ;;  %v1524_v38 = vmax.f32 %v1459_v30, %v1508_v50  ;;  %v4660_v56 = vrot.slane %v442_v24, %v4654_v51  ;;  %v4663_v57 = vrot.slane %v442_v24, %v4657_v25 }
 0x2d5   : > { %v3665_v44 = vpop.permute.xlu1 %3664  ;;  %v3660_v9 = vpop.permute.xlu0 %3659  ;;  %v1534_v13 = vpack.c.bf16 %v1524_v38, %v1523_v55 }
 0x2d6   : > { %v3667_v15 = vunpack.i.h.bf16 %v3665_v44  ;;  %v3666_v45 = vunpack.i.l.bf16 %v3665_v44  ;;  %v3662_v6 = vunpack.i.h.bf16 %v3660_v9  ;;  %v3661_v4 = vunpack.i.l.bf16 %v3660_v9 }
 0x2d8   : > { %v1445_v3 = vsel %vm4538_vm4, %v3662_v6, 0.0  ;;  %v1444_v43 = vsel %vm4538_vm4, %v3661_v4, 0.0  ;;  %v1510_v58 = vsel %vm4546_vm15, %v3667_v15, 0.0  ;;  %v1509_v11 = vsel %vm4546_vm15, %v3666_v45, 0.0 }
 0x2d9   : > { %v1461_v46 = vmax.f32 %v1395_v29, %v1445_v3  ;;  %v1460_v48 = vmax.f32 %v1394_v61, %v1444_v43  ;;  %1711 = vmatmul.mubr.bf16.gmra.mrb[68].mxu0 %v1534_v13 }
 0x2da   : > { %1720 = vmatprep.mubr.bf16.mxu0 %v4008_v0 }
 0x2db   : > { %v1525_v17 = vmax.f32 %v1460_v48, %v1509_v11  ;;  %v1526_v8 = vmax.f32 %v1461_v46, %v1510_v58 }
 0x2dd   : > { %v3675_v12 = vpop.permute.xlu1 %3674  ;;  %v3670_v59 = vpop.permute.xlu0 %3669  ;;  %v1535_v60 = vpack.c.bf16 %v1526_v8, %v1525_v17 }
 0x2de   : > { %v3677_v16 = vunpack.i.h.bf16 %v3675_v12  ;;  %v3676_v10 = vunpack.i.l.bf16 %v3675_v12  ;;  %v3672_v28 = vunpack.i.h.bf16 %v3670_v59  ;;  %v3671_v29 = vunpack.i.l.bf16 %v3670_v59 }
 0x2e0   : > { %v1447_v26 = vsel %vm4538_vm4, %v3672_v28, 0.0  ;;  %v1446_v61 = vsel %vm4538_vm4, %v3671_v29, 0.0  ;;  %v1512_v35 = vsel %vm4546_vm15, %v3677_v16, 0.0  ;;  %v1511_v32 = vsel %vm4546_vm15, %v3676_v10, 0.0 }
 0x2e1   : > { %v1463_v62 = vmax.f32 %v1397_v52, %v1447_v26  ;;  %v1462_v33 = vmax.f32 %v1396_v23, %v1446_v61  ;;  %1721 = vmatmul.mubr.bf16.gmra.mrb[72].mxu0 %v1535_v60  ;;  %v3755_v52 = vld [vmem:[#allocation2 + $0x600] ss:$16 sps:$4 sm:$0xff]   ;;  %v3758_v23 = vld [vmem:[#allocation2 + $0x724] ss:$16 sps:$4 sm:$0xff]  }
 0x2e2   : > { %1730 = vmatprep.mubr.bf16.mxu0 %v4008_v0  ;;  %3479 = vmatpush3.bf16.msra.mxu1 %v3755_v52 }
 0x2e3   : > { %v1528_v36 = vmax.f32 %v1463_v62, %v1512_v35  ;;  %v1527_v37 = vmax.f32 %v1462_v33, %v1511_v32  ;;  %2097 = vmatprep.subr.bf16.mxu0 %v3758_v23 }
 0x2e4   : > { %2098 = vmatpush1.bf16.msra.mxu0 %v3756_v47 }
 0x2e5   : > { %v1536_v39 = vpack.c.bf16 %v1528_v36, %v1527_v37  ;;  %2099 = vmatprep.subr.bf16.mxu0 %v3761_v21 }
 0x2e8   : > { %2100 = vmatpush1.bf16.msra.mxu0 %v3759_v41 }
 0x2e9   : > { %1731 = vmatmul.mubr.bf16.gmra.mrb[76].mxu0 %v1536_v39  ;;  %2101 = vmatprep.subr.bf16.mxu0 %v3764_v42 }
 0x2ea   : > { %2129 = vmatprep.mubr.bf16.mxu0 %v4008_v0 }
 0x2ec   : > { %2102 = vmatpush1.bf16.msra.mxu0 %v3762_v63 }
 0x2ed   : > { %2103 = vmatprep.subr.bf16.mxu0 %v3767_v34 }
 0x2f0   : > { %2104 = vmatpush1.bf16.msra.mxu0 %v3765_v40 }
 0x2f1   : > { %2105 = vmatprep.subr.bf16.mxu0 %v3770_v1 }
 0x2f4   : > { %2106 = vmatpush1.bf16.msra.mxu0 %v3768_v2 }
 0x2f5   : > { %2107 = vmatprep.subr.bf16.mxu0 %v3773_v5 }
 0x2f8   : > { %2108 = vmatpush1.bf16.msra.mxu0 %v3771_v18 }
 0x2f9   : > { %2109 = vmatprep.subr.bf16.mxu0 %v3776_v19 }
 0x2fc   : > { %2110 = vmatpush1.bf16.msra.mxu0 %v3774_v7 }
 0x384   : > { %v1662_v27 = vpop.f32.mrb[48].mxu0 }
 0x385   : > { %v1663_v31 = vadd.f32 %v1662_v27, %v4660_v56  ;;  %v1664_v22 = vpop.f32.mrb[49].mxu0 }
 0x386   : > { %v1665_v14 = vadd.f32 %v1664_v22, %v4663_v57  ;;  %v1666_v30 = vpop.f32.mrb[50].mxu0 }
 0x387   : > { %v1667_v53 = vadd.f32 %v1666_v30, %v4660_v56  ;;  %v1668_v50 = vpop.f32.mrb[51].mxu0  ;;  %v1741_v55 = vmax.f32 %v1663_v31, 0.0 }
 0x388   : > { %v1669_v54 = vadd.f32 %v1668_v50, %v4663_v57  ;;  %v1742_v44 = vmax.f32 %v1665_v14, 0.0 }
 0x389   : > { %v1743_v38 = vmax.f32 %v1667_v53, 0.0 }
 0x38a   : > { %v1744_v9 = vmax.f32 %v1669_v54, 0.0 }
 0x38b   : > { %v1773_v15 = vpack.c.bf16 %v1743_v38, %v1741_v55 }
 0x38c   : > { %v1774_v45 = vpack.c.bf16 %v1744_v9, %v1742_v44  ;;  %v1672_v6 = vpop.f32.mrb[52].mxu0 }
 0x38d   : > { %v1673_v4 = vadd.f32 %v1672_v6, %v4660_v56  ;;  %v1674_v13 = vpop.f32.mrb[53].mxu0 }
 0x38e   : > { %v1675_v3 = vadd.f32 %v1674_v13, %v4663_v57  ;;  %v1676_v43 = vpop.f32.mrb[54].mxu0  ;;  %1917 = vmatprep.mubr.bf16.mxu1 %v1774_v45 }
 0x38f   : > { %v1677_v46 = vadd.f32 %v1676_v43, %v4660_v56  ;;  %v1678_v48 = vpop.f32.mrb[55].mxu0  ;;  %1918 = vmatmul.mubr.bf16.vlgmr.msra.gmra.mrb[80].mxu1 %v1773_v15  ;;  %v1745_v11 = vmax.f32 %v1673_v4, 0.0 }
 0x390   : > { %v1679_v58 = vadd.f32 %v1678_v48, %v4663_v57  ;;  %v1746_v8 = vmax.f32 %v1675_v3, 0.0 }
 0x391   : > { %v1747_v17 = vmax.f32 %v1677_v46, 0.0 }
 0x392   : > { %v1748_v12 = vmax.f32 %v1679_v58, 0.0 }
 0x393   : > { %v1775_v59 = vpack.c.bf16 %v1747_v17, %v1745_v11 }
 0x394   : > { %v1776_v16 = vpack.c.bf16 %v1748_v12, %v1746_v8  ;;  %v1682_v10 = vpop.f32.mrb[56].mxu0 }
 0x395   : > { %v1683_v28 = vadd.f32 %v1682_v10, %v4660_v56  ;;  %v1684_v29 = vpop.f32.mrb[57].mxu0 }
 0x396   : > { %v1685_v60 = vadd.f32 %v1684_v29, %v4663_v57  ;;  %v1686_v26 = vpop.f32.mrb[58].mxu0  ;;  %1925 = vmatprep.mubr.bf16.mxu1 %v1776_v16 }
 0x397   : > { %v1687_v61 = vadd.f32 %v1686_v26, %v4660_v56  ;;  %v1688_v62 = vpop.f32.mrb[59].mxu0  ;;  %1926 = vmatmul.mubr.bf16.gmra.mrb[84].mxu1 %v1775_v59  ;;  %v1749_v35 = vmax.f32 %v1683_v28, 0.0 }
 0x398   : > { %v1689_v33 = vadd.f32 %v1688_v62, %v4663_v57  ;;  %v1750_v36 = vmax.f32 %v1685_v60, 0.0 }
 0x399   : > { %v1751_v32 = vmax.f32 %v1687_v61, 0.0 }
 0x39a   : > { %v1752_v37 = vmax.f32 %v1689_v33, 0.0 }
 0x39b   : > { %v1777_v39 = vpack.c.bf16 %v1751_v32, %v1749_v35 }
 0x39c   : > { %v1778_v49 = vpack.c.bf16 %v1752_v37, %v1750_v36  ;;  %v1692_v52 = vpop.f32.mrb[60].mxu0 }
 0x39d   : > { %v1693_v47 = vadd.f32 %v1692_v52, %v4660_v56  ;;  %v1694_v23 = vpop.f32.mrb[61].mxu0 }
 0x39e   : > { %v1695_v21 = vadd.f32 %v1694_v23, %v4663_v57  ;;  %v1696_v41 = vpop.f32.mrb[62].mxu0  ;;  %1933 = vmatprep.mubr.bf16.mxu1 %v1778_v49 }
 0x39f   : > { %v1697_v42 = vadd.f32 %v1696_v41, %v4660_v56  ;;  %v1698_v63 = vpop.f32.mrb[63].mxu0  ;;  %1934 = vmatmul.mubr.bf16.gmra.mrb[88].mxu1 %v1777_v39  ;;  %v1753_v40 = vmax.f32 %v1693_v47, 0.0 }
 0x3a0   : > { %v1699_v34 = vadd.f32 %v1698_v63, %v4663_v57  ;;  %v1754_v2 = vmax.f32 %v1695_v21, 0.0 }
 0x3a1   : > { %v1755_v1 = vmax.f32 %v1697_v42, 0.0 }
 0x3a2   : > { %v1756_v5 = vmax.f32 %v1699_v34, 0.0 }
 0x3a3   : > { %v1779_v18 = vpack.c.bf16 %v1755_v1, %v1753_v40 }
 0x3a4   : > { %v1780_v19 = vpack.c.bf16 %v1756_v5, %v1754_v2  ;;  %v1702_v7 = vpop.f32.mrb[64].mxu0 }
 0x3a5   : > { %v1703_v24 = vadd.f32 %v1702_v7, %v4660_v56  ;;  %v1704_v27 = vpop.f32.mrb[65].mxu0  ;;  %v3780_v7 = vld [vmem:[#allocation2 + $0x820] ss:$16 sps:$4 sm:$0xff]  }
 0x3a6   : > { %v1705_v31 = vadd.f32 %v1704_v27, %v4663_v57  ;;  %v1706_v22 = vpop.f32.mrb[66].mxu0  ;;  %1941 = vmatprep.mubr.bf16.mxu1 %v1780_v19  ;;  %v3779_v19 = vld [vmem:[#allocation2 + $0x804] ss:$16 sps:$4 sm:$0xff]   ;;  %v3785_v27 = vld [vmem:[#allocation2 + $0x82c] ss:$16 sps:$4 sm:$0xff]  }
 0x3a7   : > { %v1707_v14 = vadd.f32 %v1706_v22, %v4660_v56  ;;  %v1708_v30 = vpop.f32.mrb[67].mxu0  ;;  %1942 = vmatmul.mubr.bf16.gmra.mrb[92].mxu1 %v1779_v18  ;;  %v1757_v50 = vmax.f32 %v1703_v24, 0.0  ;;  %v3777_v18 = vld [vmem:[#allocation2 + $0x800] ss:$16 sps:$4 sm:$0xff]   ;;  %2111 = vmatprep.subr.bf16.mxu0 %v3779_v19  ;;  %v3782_v24 = vld [vmem:[#allocation2 + $0x824] ss:$16 sps:$4 sm:$0xff]  }
 0x3a8   : > { %v1709_v53 = vadd.f32 %v1708_v30, %v4663_v57  ;;  %v1758_v55 = vmax.f32 %v1705_v31, 0.0  ;;  %2112 = vmatpush1.bf16.msra.mxu0 %v3777_v18  ;;  %2599 = vmatprep.subr.bf16.mxu1 %v3782_v24  ;;  %v3794_v31 = vld [vmem:[#allocation2 + $0x864] ss:$16 sps:$4 sm:$0xff]   ;;  %v3792_v22 = vld [vmem:[#allocation2 + $0x860] ss:$16 sps:$4 sm:$0xff]  }
 0x3a9   : > { %v1759_v54 = vmax.f32 %v1707_v14, 0.0  ;;  %2712 = vmatprep.subr.bf16.mxu0 %v3785_v27  ;;  %2600 = vmatpush1.bf16.msra.mxu1 %v3780_v7  ;;  %v3800_v14 = vld [vmem:[#allocation2 + $0x884] ss:$16 sps:$4 sm:$0xff]   ;;  %v3798_v30 = vld [vmem:[#allocation2 + $0x880] ss:$16 sps:$4 sm:$0xff]  }
 0x3aa   : > { %v1760_v38 = vmax.f32 %v1709_v53, 0.0  ;;  %v3806_v53 = vld [vmem:[#allocation2 + $0x8a4] ss:$16 sps:$4 sm:$0xff]   ;;  %v3801_v19 = vld [vmem:[#allocation2 + $0x888] ss:$16 sps:$4 sm:$0xff]  }
 0x3ab   : > { %v1781_v44 = vpack.c.bf16 %v1759_v54, %v1757_v50  ;;  %v3804_v50 = vld [vmem:[#allocation2 + $0x8a0] ss:$16 sps:$4 sm:$0xff]   ;;  %v3812_v54 = vld [vmem:[#allocation2 + $0x8c4] ss:$16 sps:$4 sm:$0xff]   ;;  %v3809_v27 = vld [vmem:[#allocation2 + $0x8ac] ss:$16 sps:$4 sm:$0xff]  }
 0x3ac   : > { %v1782_v9 = vpack.c.bf16 %v1760_v38, %v1758_v55  ;;  %v1712_v15 = vpop.f32.mrb[68].mxu0  ;;  %v3810_v55 = vld [vmem:[#allocation2 + $0x8c0] ss:$16 sps:$4 sm:$0xff]   ;;  %v3818_v38 = vld [vmem:[#allocation2 + $0x8e4] ss:$16 sps:$4 sm:$0xff]  }
 0x3ad   : > { %v1713_v45 = vadd.f32 %v1712_v15, %v4660_v56  ;;  %v1714_v6 = vpop.f32.mrb[69].mxu0  ;;  %v3822_v15 = vld [vmem:[#allocation2 + $0x900] ss:$16 sps:$4 sm:$0xff]  }
 0x3ae   : > { %v1715_v4 = vadd.f32 %v1714_v6, %v4663_v57  ;;  %v1716_v13 = vpop.f32.mrb[70].mxu0  ;;  %1949 = vmatprep.mubr.bf16.mxu1 %v1782_v9  ;;  %v3824_v9 = vld [vmem:[#allocation2 + $0x904] ss:$16 sps:$4 sm:$0xff]   ;;  %v3828_v6 = vld [vmem:[#allocation2 + $0x920] ss:$16 sps:$4 sm:$0xff]  }
 0x3af   : > { %v1717_v3 = vadd.f32 %v1716_v13, %v4660_v56  ;;  %v1718_v43 = vpop.f32.mrb[71].mxu0  ;;  %1950 = vmatmul.mubr.bf16.gmra.mrb[96].mxu1 %v1781_v44  ;;  %v1761_v48 = vmax.f32 %v1713_v45, 0.0  ;;  %v3816_v44 = vld [vmem:[#allocation2 + $0x8e0] ss:$16 sps:$4 sm:$0xff]   ;;  %v3830_v45 = vld [vmem:[#allocation2 + $0x924] ss:$16 sps:$4 sm:$0xff]  }
 0x3b0   : > { %v1719_v46 = vadd.f32 %v1718_v43, %v4663_v57  ;;  %v1762_v11 = vmax.f32 %v1715_v4, 0.0  ;;  %v3836_v4 = vld [vmem:[#allocation2 + $0x944] ss:$16 sps:$4 sm:$0xff]   ;;  %v3834_v13 = vld [vmem:[#allocation2 + $0x940] ss:$16 sps:$4 sm:$0xff]  }
 0x3b1   : > { %v1763_v58 = vmax.f32 %v1717_v3, 0.0  ;;  %v3842_v3 = vld [vmem:[#allocation2 + $0x964] ss:$16 sps:$4 sm:$0xff]   ;;  %v3840_v43 = vld [vmem:[#allocation2 + $0x960] ss:$16 sps:$4 sm:$0xff]  }
 0x3b2   : > { %v1764_v17 = vmax.f32 %v1719_v46, 0.0  ;;  %v3848_v46 = vld [vmem:[#allocation2 + $0x984] ss:$16 sps:$4 sm:$0xff]  }
 0x3b3   : > { %v1783_v8 = vpack.c.bf16 %v1763_v58, %v1761_v48  ;;  %v3846_v48 = vld [vmem:[#allocation2 + $0x980] ss:$16 sps:$4 sm:$0xff]   ;;  %v3854_v58 = vld [vmem:[#allocation2 + $0x9a4] ss:$16 sps:$4 sm:$0xff]  }
 0x3b4   : > { %v1784_v12 = vpack.c.bf16 %v1764_v17, %v1762_v11  ;;  %v1722_v59 = vpop.f32.mrb[72].mxu0  ;;  %v3852_v11 = vld [vmem:[#allocation2 + $0x9a0] ss:$16 sps:$4 sm:$0xff]   ;;  %v3860_v17 = vld [vmem:[#allocation2 + $0x9c4] ss:$16 sps:$4 sm:$0xff]  }
 0x3b5   : > { %v1723_v16 = vadd.f32 %v1722_v59, %v4660_v56  ;;  %v1724_v10 = vpop.f32.mrb[73].mxu0  ;;  %v4700_v59 = vld [vmem:[#allocation5 + $0x2] ss:$0 sm:$0xff] }
 0x3b6   : > { %v1725_v28 = vadd.f32 %v1724_v10, %v4663_v57  ;;  %v1726_v29 = vpop.f32.mrb[74].mxu0  ;;  %1957 = vmatprep.mubr.bf16.mxu1 %v1784_v12 }
 0x3b7   : > { %v1727_v60 = vadd.f32 %v1726_v29, %v4660_v56  ;;  %v1728_v26 = vpop.f32.mrb[75].mxu0  ;;  %1958 = vmatmul.mubr.bf16.gmra.mrb[100].mxu1 %v1783_v8  ;;  %v1765_v62 = vmax.f32 %v1723_v16, 0.0  ;;  %v3858_v8 = vld [vmem:[#allocation2 + $0x9c0] ss:$16 sps:$4 sm:$0xff]  }
 0x3b8   : > { %v1729_v61 = vadd.f32 %v1728_v26, %v4663_v57  ;;  %v1766_v35 = vmax.f32 %v1725_v28, 0.0 }
 0x3b9   : > { %v1767_v33 = vmax.f32 %v1727_v60, 0.0 }
 0x3ba   : > { %v1768_v32 = vmax.f32 %v1729_v61, 0.0 }
 0x3bb   : > { %v1785_v36 = vpack.c.bf16 %v1767_v33, %v1765_v62  ;;  %v3783_v62 = vld [vmem:[#allocation2 + $0x828] ss:$16 sps:$4 sm:$0xff]  }
 0x3bc   : > { %v1786_v37 = vpack.c.bf16 %v1768_v32, %v1766_v35  ;;  %v1732_v39 = vpop.f32.mrb[76].mxu0  ;;  %v3791_v32 = vld [vmem:[#allocation2 + $0x84c] ss:$16 sps:$4 sm:$0xff]  }
 0x3bd   : > { %v1733_v49 = vadd.f32 %v1732_v39, %v4660_v56  ;;  %v1734_v52 = vpop.f32.mrb[77].mxu0 }
 0x3be   : > { %v1735_v47 = vadd.f32 %v1734_v52, %v4663_v57  ;;  %v1736_v23 = vpop.f32.mrb[78].mxu0  ;;  %1965 = vmatprep.mubr.bf16.mxu1 %v1786_v37  ;;  %v3789_v52 = vld [vmem:[#allocation2 + $0x848] ss:$16 sps:$4 sm:$0xff]  }
 0x3bf   : > { %v1737_v21 = vadd.f32 %v1736_v23, %v4660_v56  ;;  %v1738_v41 = vpop.f32.mrb[79].mxu0  ;;  %1966 = vmatmul.mubr.bf16.gmra.mrb[104].mxu1 %v1785_v36  ;;  %v1769_v63 = vmax.f32 %v1733_v49, 0.0  ;;  %v3788_v56 = vld [vmem:[#allocation2 + $0x844] ss:$16 sps:$4 sm:$0xff]  }
 0x3c0   : > { %v1739_v42 = vadd.f32 %v1738_v41, %v4663_v57  ;;  %v1770_v40 = vmax.f32 %v1735_v47, 0.0  ;;  %v3786_v57 = vld [vmem:[#allocation2 + $0x840] ss:$16 sps:$4 sm:$0xff]   ;;  %2601 = vmatprep.subr.bf16.mxu1 %v3788_v56 }
 0x3c1   : > { %v1771_v34 = vmax.f32 %v1737_v21, 0.0  ;;  %2602 = vmatpush1.bf16.msra.mxu1 %v3786_v57  ;;  %v3797_v21 = vld [vmem:[#allocation2 + $0x86c] ss:$16 sps:$4 sm:$0xff]   ;;  %v3807_v57 = vld [vmem:[#allocation2 + $0x8a8] ss:$16 sps:$4 sm:$0xff]  }
 0x3c2   : > { %v1772_v1 = vmax.f32 %v1739_v42, 0.0  ;;  %2603 = vmatprep.subr.bf16.mxu1 %v3794_v31  ;;  %v3795_v42 = vld [vmem:[#allocation2 + $0x868] ss:$16 sps:$4 sm:$0xff]  }
 0x3c3   : > { %v1787_v2 = vpack.c.bf16 %v1771_v34, %v1769_v63 }
 0x3c4   : > { %v1788_v5 = vpack.c.bf16 %v1772_v1, %v1770_v40  ;;  %v3803_v40 = vld [vmem:[#allocation2 + $0x88c] ss:$16 sps:$4 sm:$0xff]  }
 0x3c5   : > { %2604 = vmatpush1.bf16.msra.mxu1 %v3792_v22 }
 0x3c6   : > { %1973 = vmatprep.mubr.bf16.mxu1 %v1788_v5  ;;  %2605 = vmatprep.subr.bf16.mxu1 %v3800_v14  ;;  %v3815_v14 = vld [vmem:[#allocation2 + $0x8cc] ss:$16 sps:$4 sm:$0xff]  }
 0x3c7   : > { %1974 = vmatmul.mubr.bf16.gmra.mrb[108].mxu1 %v1787_v2 }
 0x3c9   : > { %2606 = vmatpush1.bf16.msra.mxu1 %v3798_v30 }
 0x3ca   : > { %2607 = vmatprep.subr.bf16.mxu1 %v3806_v53 }
 0x3cd   : > { %2608 = vmatpush1.bf16.msra.mxu1 %v3804_v50 }
 0x3ce   : > { %2609 = vmatprep.subr.bf16.mxu1 %v3812_v54 }
 0x3d1   : > { %2610 = vmatpush1.bf16.msra.mxu1 %v3810_v55  ;;  %v3813_v55 = vld [vmem:[#allocation2 + $0x8c8] ss:$16 sps:$4 sm:$0xff]  }
 0x3d2   : > { %2611 = vmatprep.subr.bf16.mxu1 %v3818_v38 }
 0x3d5   : > { %2612 = vmatpush1.bf16.msra.mxu1 %v3816_v44 }
 0x3d6   : > { %2613 = vmatprep.subr.bf16.mxu1 %v3824_v9  ;;  %v3821_v9 = vld [vmem:[#allocation2 + $0x8ec] ss:$16 sps:$4 sm:$0xff]  }
 0x3d9   : > { %2614 = vmatpush1.bf16.msra.mxu1 %v3822_v15 }
 0x3da   : > { %2615 = vmatprep.subr.bf16.mxu1 %v3830_v45  ;;  %v3819_v45 = vld [vmem:[#allocation2 + $0x8e8] ss:$16 sps:$4 sm:$0xff]  }
 0x3dd   : > { %2616 = vmatpush1.bf16.msra.mxu1 %v3828_v6 }
 0x3de   : > { %2617 = vmatprep.subr.bf16.mxu1 %v3836_v4 }
 0x3e1   : > { %2618 = vmatpush1.bf16.msra.mxu1 %v3834_v13  ;;  %v3827_v13 = vld [vmem:[#allocation2 + $0x90c] ss:$16 sps:$4 sm:$0xff]  }
 0x3e2   : > { %2619 = vmatprep.subr.bf16.mxu1 %v3842_v3 }
 0x3e5   : > { %2620 = vmatpush1.bf16.msra.mxu1 %v3840_v43 }
 0x3e6   : > { %2621 = vmatprep.subr.bf16.mxu1 %v3848_v46 }
 0x3e9   : > { %2622 = vmatpush1.bf16.msra.mxu1 %v3846_v48 }
 0x3ea   : > { %2623 = vmatprep.subr.bf16.mxu1 %v3854_v58  ;;  %v3825_v58 = vld [vmem:[#allocation2 + $0x908] ss:$16 sps:$4 sm:$0xff]  }
 0x3ed   : > { %2624 = vmatpush1.bf16.msra.mxu1 %v3852_v11 }
 0x3ee   : > { %2625 = vmatprep.subr.bf16.mxu1 %v3860_v17 }
 0x3f1   : > { %2626 = vmatpush1.bf16.msra.mxu1 %v3858_v8  ;;  %v3833_v8 = vld [vmem:[#allocation2 + $0x92c] ss:$16 sps:$4 sm:$0xff]  }
 0x462   : > { %v3480_v12 = vpop.f32.mrb[80].mxu1 }
 0x463   : > { %v3481_v16 = vpop.f32.mrb[81].mxu1 }
 0x464   : > { %v3482_v10 = vadd.f32 %v3481_v16, %v3480_v12  ;;  %v3483_v28 = vpop.f32.mrb[82].mxu1  ;;  %v3831_v16 = vld [vmem:[#allocation2 + $0x928] ss:$16 sps:$4 sm:$0xff]  }
 0x465   : > { %v3484_v29 = vpop.f32.mrb[83].mxu1 }
 0x466   : > { %v1920_v60 = vadd.f32 %v3482_v10, %v4700_v59  ;;  %v3485_v26 = vadd.f32 %v3484_v29, %v3483_v28  ;;  %v3839_v29 = vld [vmem:[#allocation2 + $0x94c] ss:$16 sps:$4 sm:$0xff]  }
 0x468   : > { %1982 = vst [vmem:[%s4703_s8] sm:$0xff] %v1920_v60  ;;  %v1923_v61 = vadd.f32 %v3485_v26, %v4700_v59 }
 0x46a   : > { %1983 = vst [vmem:[%s4703_s8 + $0x8] sm:$0xff] %v1923_v61  ;;  %v1998_v33 = vpack.c.bf16 %v1923_v61, %v1920_v60  ;;  %v3486_v35 = vpop.f32.mrb[84].mxu1 }
 0x46b   : > { %v3487_v36 = vpop.f32.mrb[85].mxu1 }
 0x46c   : > { %v3488_v37 = vadd.f32 %v3487_v36, %v3486_v35  ;;  %v3489_v39 = vpop.f32.mrb[86].mxu1  ;;  %2130 = vmatmul.mubr.bf16.vlgmr.msra.gmra.mrb[80].mxu0 %v1998_v33  ;;  %v3837_v33 = vld [vmem:[#allocation2 + $0x948] ss:$16 sps:$4 sm:$0xff]   ;;  %v3845_v36 = vld [vmem:[#allocation2 + $0x96c] ss:$16 sps:$4 sm:$0xff]  }
 0x46d   : > { %v3490_v49 = vpop.f32.mrb[87].mxu1  ;;  %2139 = vmatprep.mubr.bf16.mxu0 %v4008_v0  ;;  %2713 = vmatpush1.bf16.msra.mxu0 %v3783_v62 }
 0x46e   : > { %v1928_v47 = vadd.f32 %v3488_v37, %v4700_v59  ;;  %v3491_v23 = vadd.f32 %v3490_v49, %v3489_v39  ;;  %2714 = vmatprep.subr.bf16.mxu0 %v3791_v32  ;;  %v3843_v39 = vld [vmem:[#allocation2 + $0x968] ss:$16 sps:$4 sm:$0xff]  }
 0x470   : > { %1984 = vst [vmem:[%s4703_s8 + $0x10] sm:$0xff] %v1928_v47  ;;  %v1931_v41 = vadd.f32 %v3491_v23, %v4700_v59 }
 0x471   : > { %2715 = vmatpush1.bf16.msra.mxu0 %v3789_v52 }
 0x472   : > { %1985 = vst [vmem:[%s4703_s8 + $0x18] sm:$0xff] %v1931_v41  ;;  %v3492_v63 = vpop.f32.mrb[88].mxu1  ;;  %v1999_v34 = vpack.c.bf16 %v1931_v41, %v1928_v47  ;;  %2716 = vmatprep.subr.bf16.mxu0 %v3797_v21  ;;  %v3851_v47 = vld [vmem:[#allocation2 + $0x98c] ss:$16 sps:$4 sm:$0xff]  }
 0x473   : > { %v3493_v1 = vpop.f32.mrb[89].mxu1 }
 0x474   : > { %v3494_v2 = vadd.f32 %v3493_v1, %v3492_v63  ;;  %v3495_v5 = vpop.f32.mrb[90].mxu1  ;;  %2140 = vmatmul.mubr.bf16.gmra.mrb[84].mxu0 %v1999_v34  ;;  %v3849_v63 = vld [vmem:[#allocation2 + $0x988] ss:$16 sps:$4 sm:$0xff]   ;;  %v3857_v1 = vld [vmem:[#allocation2 + $0x9ac] ss:$16 sps:$4 sm:$0xff]  }
 0x475   : > { %v3496_v18 = vpop.f32.mrb[91].mxu1  ;;  %2149 = vmatprep.mubr.bf16.mxu0 %v4008_v0  ;;  %2717 = vmatpush1.bf16.msra.mxu0 %v3795_v42 }
 0x476   : > { %v1936_v7 = vadd.f32 %v3494_v2, %v4700_v59  ;;  %v3497_v24 = vadd.f32 %v3496_v18, %v3495_v5  ;;  %2718 = vmatprep.subr.bf16.mxu0 %v3803_v40  ;;  %v3855_v5 = vld [vmem:[#allocation2 + $0x9a8] ss:$16 sps:$4 sm:$0xff]  }
 0x478   : > { %1986 = vst [vmem:[%s4703_s8 + $0x20] sm:$0xff] %v1936_v7  ;;  %v1939_v56 = vadd.f32 %v3497_v24, %v4700_v59 }
 0x479   : > { %2719 = vmatpush1.bf16.msra.mxu0 %v3801_v19 }
 0x47a   : > { %1987 = vst [vmem:[%s4703_s8 + $0x28] sm:$0xff] %v1939_v56  ;;  %v3498_v31 = vpop.f32.mrb[92].mxu1  ;;  %v2000_v22 = vpack.c.bf16 %v1939_v56, %v1936_v7  ;;  %2720 = vmatprep.subr.bf16.mxu0 %v3809_v27  ;;  %v3863_v7 = vld [vmem:[#allocation2 + $0x9cc] ss:$16 sps:$4 sm:$0xff]  }
 0x47b   : > { %v3499_v30 = vpop.f32.mrb[93].mxu1 }
 0x47c   : > { %v3500_v53 = vadd.f32 %v3499_v30, %v3498_v31  ;;  %v3501_v50 = vpop.f32.mrb[94].mxu1  ;;  %2150 = vmatmul.mubr.bf16.gmra.mrb[88].mxu0 %v2000_v22  ;;  %v3861_v31 = vld [vmem:[#allocation2 + $0x9c8] ss:$16 sps:$4 sm:$0xff]  }
 0x47d   : > { %v3502_v54 = vpop.f32.mrb[95].mxu1  ;;  %2159 = vmatprep.mubr.bf16.mxu0 %v4008_v0  ;;  %2721 = vmatpush1.bf16.msra.mxu0 %v3807_v57 }
 0x47e   : > { %v1944_v38 = vadd.f32 %v3500_v53, %v4700_v59  ;;  %v3503_v44 = vadd.f32 %v3502_v54, %v3501_v50  ;;  %2722 = vmatprep.subr.bf16.mxu0 %v3815_v14  ;;  %v3866_v50 = vld [vmem:[#allocation2 + $0x9e4] ss:$16 sps:$4 sm:$0xff]   ;;  %v3869_v54 = vld [vmem:[#allocation2 + $0x9ec] ss:$16 sps:$4 sm:$0xff]  }
 0x47f   : > { %2627 = vmatprep.subr.bf16.mxu1 %v3866_v50 }
 0x480   : > { %1988 = vst [vmem:[%s4703_s8 + $0x30] sm:$0xff] %v1944_v38  ;;  %v1947_v15 = vadd.f32 %v3503_v44, %v4700_v59  ;;  %v3875_v44 = vld [vmem:[#allocation2 + $0xa0c] ss:$16 sps:$4 sm:$0xff]  }
 0x481   : > { %2723 = vmatpush1.bf16.msra.mxu0 %v3813_v55  ;;  %v3864_v55 = vld [vmem:[#allocation2 + $0x9e0] ss:$16 sps:$4 sm:$0xff]  }
 0x482   : > { %1989 = vst [vmem:[%s4703_s8 + $0x38] sm:$0xff] %v1947_v15  ;;  %v3504_v6 = vpop.f32.mrb[96].mxu1  ;;  %v2001_v4 = vpack.c.bf16 %v1947_v15, %v1944_v38  ;;  %2724 = vmatprep.subr.bf16.mxu0 %v3821_v9  ;;  %v3867_v38 = vld [vmem:[#allocation2 + $0x9e8] ss:$16 sps:$4 sm:$0xff]   ;;  %2628 = vmatpush1.bf16.msra.mxu1 %v3864_v55  ;;  %v3870_v9 = vld [vmem:[#allocation2 + $0xa00] ss:$16 sps:$4 sm:$0xff]  }
 0x483   : > { %v3505_v3 = vpop.f32.mrb[97].mxu1  ;;  %v3873_v15 = vld [vmem:[#allocation2 + $0xa08] ss:$16 sps:$4 sm:$0xff]  }
 0x484   : > { %v3506_v43 = vadd.f32 %v3505_v3, %v3504_v6  ;;  %v3507_v46 = vpop.f32.mrb[98].mxu1  ;;  %2160 = vmatmul.mubr.bf16.gmra.mrb[92].mxu0 %v2001_v4 }
 0x485   : > { %v3508_v48 = vpop.f32.mrb[99].mxu1  ;;  %2169 = vmatprep.mubr.bf16.mxu0 %v4008_v0  ;;  %2725 = vmatpush1.bf16.msra.mxu0 %v3819_v45 }
 0x486   : > { %v1952_v11 = vadd.f32 %v3506_v43, %v4700_v59  ;;  %v3509_v17 = vadd.f32 %v3508_v48, %v3507_v46  ;;  %2726 = vmatprep.subr.bf16.mxu0 %v3827_v13 }
 0x488   : > { %1990 = vst [vmem:[%s4703_s8 + $0x40] sm:$0xff] %v1952_v11  ;;  %v1955_v12 = vadd.f32 %v3509_v17, %v4700_v59 }
 0x489   : > { %2727 = vmatpush1.bf16.msra.mxu0 %v3825_v58 }
 0x48a   : > { %1991 = vst [vmem:[%s4703_s8 + $0x48] sm:$0xff] %v1955_v12  ;;  %v3510_v10 = vpop.f32.mrb[100].mxu1  ;;  %v2002_v28 = vpack.c.bf16 %v1955_v12, %v1952_v11  ;;  %2728 = vmatprep.subr.bf16.mxu0 %v3833_v8 }
 0x48b   : > { %v3511_v60 = vpop.f32.mrb[101].mxu1 }
 0x48c   : > { %v3512_v26 = vadd.f32 %v3511_v60, %v3510_v10  ;;  %v3513_v61 = vpop.f32.mrb[102].mxu1  ;;  %2170 = vmatmul.mubr.bf16.gmra.mrb[96].mxu0 %v2002_v28 }
 0x48d   : > { %v3514_v62 = vpop.f32.mrb[103].mxu1  ;;  %2179 = vmatprep.mubr.bf16.mxu0 %v4008_v0  ;;  %2729 = vmatpush1.bf16.msra.mxu0 %v3831_v16 }
 0x48e   : > { %v1960_v35 = vadd.f32 %v3512_v26, %v4700_v59  ;;  %v3515_v32 = vadd.f32 %v3514_v62, %v3513_v61  ;;  %2730 = vmatprep.subr.bf16.mxu0 %v3839_v29 }
 0x490   : > { %1992 = vst [vmem:[%s4703_s8 + $0x50] sm:$0xff] %v1960_v35  ;;  %v1963_v37 = vadd.f32 %v3515_v32, %v4700_v59 }
 0x491   : > { %2731 = vmatpush1.bf16.msra.mxu0 %v3837_v33 }
 0x492   : > { %1993 = vst [vmem:[%s4703_s8 + $0x58] sm:$0xff] %v1963_v37  ;;  %v3516_v49 = vpop.f32.mrb[104].mxu1  ;;  %v2003_v52 = vpack.c.bf16 %v1963_v37, %v1960_v35  ;;  %2732 = vmatprep.subr.bf16.mxu0 %v3845_v36 }
 0x493   : > { %v3517_v23 = vpop.f32.mrb[105].mxu1 }
 0x494   : > { %v3518_v21 = vadd.f32 %v3517_v23, %v3516_v49  ;;  %v3519_v41 = vpop.f32.mrb[106].mxu1  ;;  %2180 = vmatmul.mubr.bf16.gmra.mrb[100].mxu0 %v2003_v52 }
 0x495   : > { %v3520_v42 = vpop.f32.mrb[107].mxu1  ;;  %2189 = vmatprep.mubr.bf16.mxu0 %v4008_v0  ;;  %2733 = vmatpush1.bf16.msra.mxu0 %v3843_v39 }
 0x496   : > { %v1968_v34 = vadd.f32 %v3518_v21, %v4700_v59  ;;  %v3521_v40 = vadd.f32 %v3520_v42, %v3519_v41  ;;  %2734 = vmatprep.subr.bf16.mxu0 %v3851_v47 }
 0x498   : > { %1994 = vst [vmem:[%s4703_s8 + $0x60] sm:$0xff] %v1968_v34  ;;  %v1971_v2 = vadd.f32 %v3521_v40, %v4700_v59 }
 0x499   : > { %2735 = vmatpush1.bf16.msra.mxu0 %v3849_v63 }
 0x49a   : > { %1995 = vst [vmem:[%s4703_s8 + $0x68] sm:$0xff] %v1971_v2  ;;  %v3522_v18 = vpop.f32.mrb[108].mxu1  ;;  %v2004_v19 = vpack.c.bf16 %v1971_v2, %v1968_v34  ;;  %2736 = vmatprep.subr.bf16.mxu0 %v3857_v1 }
 0x49b   : > { %v3523_v24 = vpop.f32.mrb[109].mxu1 }
 0x49c   : > { %v3524_v27 = vadd.f32 %v3523_v24, %v3522_v18  ;;  %v3525_v56 = vpop.f32.mrb[110].mxu1  ;;  %2190 = vmatmul.mubr.bf16.gmra.mrb[104].mxu0 %v2004_v19 }
 0x49d   : > { %v3526_v57 = vpop.f32.mrb[111].mxu1  ;;  %2199 = vmatprep.mubr.bf16.mxu0 %v4008_v0  ;;  %2737 = vmatpush1.bf16.msra.mxu0 %v3855_v5  ;;  %v3872_v0 = vld [vmem:[#allocation2 + $0xa04] ss:$16 sps:$4 sm:$0xff]  }
 0x49e   : > { %v1976_v22 = vadd.f32 %v3524_v27, %v4700_v59  ;;  %v3527_v14 = vadd.f32 %v3526_v57, %v3525_v56  ;;  %2738 = vmatprep.subr.bf16.mxu0 %v3863_v7  ;;  %2629 = vmatprep.subr.bf16.mxu1 %v3872_v0 }
 0x49f   : > { %2630 = vmatpush1.bf16.msra.mxu1 %v3870_v9 }
 0x4a0   : > { %1996 = vst [vmem:[%s4703_s8 + $0x70] sm:$0xff] %v1976_v22  ;;  %v1979_v30 = vadd.f32 %v3527_v14, %v4700_v59  ;;  %v445_v59 = vld [vmem:[#allocation5 + $0x3] ss:$8 sm:$0x3] }
 0x4a1   : > { %2739 = vmatpush1.bf16.msra.mxu0 %v3861_v31  ;;  %v4744_v45 = vrot.slane %v445_v59, %v4654_v51  ;;  %v4747_v6 = vrot.slane %v445_v59, %v4657_v25 }
 0x4a2   : > { %1997 = vst [vmem:[%s4703_s8 + $0x78] sm:$0xff] %v1979_v30  ;;  %v2005_v53 = vpack.c.bf16 %v1979_v30, %v1976_v22  ;;  %2740 = vmatprep.subr.bf16.mxu0 %v3869_v54 }
 0x4a4   : > { %2200 = vmatmul.mubr.bf16.gmra.mrb[108].mxu0 %v2005_v53 }
 0x4a5   : > { %2741 = vmatpush1.bf16.msra.mxu0 %v3867_v38 }
 0x4a6   : > { %2742 = vmatprep.subr.bf16.mxu0 %v3875_v44 }
 0x4a9   : > { %2743 = vmatpush1.bf16.msra.mxu0 %v3873_v15 }
 0x53f   : > { %v2131_v4 = vpop.f32.mrb[80].mxu0 }
 0x540   : > { %v2132_v13 = vadd.f32 %v2131_v4, %v4744_v45  ;;  %v2133_v3 = vpop.f32.mrb[81].mxu0 }
 0x541   : > { %v2134_v43 = vadd.f32 %v2133_v3, %v4747_v6  ;;  %v2135_v46 = vpop.f32.mrb[82].mxu0 }
 0x542   : > { %v2136_v48 = vadd.f32 %v2135_v46, %v4744_v45  ;;  %v2137_v58 = vpop.f32.mrb[83].mxu0  ;;  %v2210_v17 = vmax.f32 %v2132_v13, 0.0 }
 0x543   : > { %v2138_v11 = vadd.f32 %v2137_v58, %v4747_v6  ;;  %v2211_v12 = vmax.f32 %v2134_v43, 0.0 }
 0x544   : > { %v2212_v8 = vmax.f32 %v2136_v48, 0.0 }
 0x545   : > { %v2213_v16 = vmax.f32 %v2138_v11, 0.0 }
 0x546   : > { %v2242_v10 = vpack.c.bf16 %v2212_v8, %v2210_v17 }
 0x547   : > { %v2243_v28 = vpack.c.bf16 %v2213_v16, %v2211_v12  ;;  %v2141_v29 = vpop.f32.mrb[84].mxu0 }
 0x548   : > { %v2142_v60 = vadd.f32 %v2141_v29, %v4744_v45  ;;  %v2143_v26 = vpop.f32.mrb[85].mxu0 }
 0x549   : > { %v2144_v61 = vadd.f32 %v2143_v26, %v4747_v6  ;;  %v2145_v62 = vpop.f32.mrb[86].mxu0  ;;  %2631 = vmatprep.mubr.bf16.mxu1 %v2243_v28  ;;  %2744 = vmatprep.mubr.bf16.mxu0 %v2243_v28 }
 0x54a   : > { %v2146_v33 = vadd.f32 %v2145_v62, %v4744_v45  ;;  %v2147_v35 = vpop.f32.mrb[87].mxu0  ;;  %2632 = vmatmul.mubr.bf16.vlgmr.msra.gmra.mrb[112].mxu1 %v2242_v10  ;;  %2745 = vmatmul.mubr.bf16.vlgmr.msra.gmra.mrb[112].mxu0 %v2242_v10  ;;  %v2214_v36 = vmax.f32 %v2142_v60, 0.0 }
 0x54b   : > { %v2148_v32 = vadd.f32 %v2147_v35, %v4747_v6  ;;  %v2215_v39 = vmax.f32 %v2144_v61, 0.0 }
 0x54c   : > { %v2216_v37 = vmax.f32 %v2146_v33, 0.0 }
 0x54d   : > { %v2217_v49 = vmax.f32 %v2148_v32, 0.0 }
 0x54e   : > { %v2244_v52 = vpack.c.bf16 %v2216_v37, %v2214_v36 }
 0x54f   : > { %v2245_v47 = vpack.c.bf16 %v2217_v49, %v2215_v39  ;;  %v2151_v23 = vpop.f32.mrb[88].mxu0 }
 0x550   : > { %v2152_v21 = vadd.f32 %v2151_v23, %v4744_v45  ;;  %v2153_v41 = vpop.f32.mrb[89].mxu0 }
 0x551   : > { %v2154_v42 = vadd.f32 %v2153_v41, %v4747_v6  ;;  %v2155_v63 = vpop.f32.mrb[90].mxu0  ;;  %2641 = vmatprep.mubr.bf16.mxu1 %v2245_v47  ;;  %2754 = vmatprep.mubr.bf16.mxu0 %v2245_v47 }
 0x552   : > { %v2156_v34 = vadd.f32 %v2155_v63, %v4744_v45  ;;  %v2157_v40 = vpop.f32.mrb[91].mxu0  ;;  %2642 = vmatmul.mubr.bf16.gmra.mrb[116].mxu1 %v2244_v52  ;;  %2755 = vmatmul.mubr.bf16.gmra.mrb[116].mxu0 %v2244_v52  ;;  %v2218_v2 = vmax.f32 %v2152_v21, 0.0 }
 0x553   : > { %v2158_v1 = vadd.f32 %v2157_v40, %v4747_v6  ;;  %v2219_v18 = vmax.f32 %v2154_v42, 0.0 }
 0x554   : > { %v2220_v5 = vmax.f32 %v2156_v34, 0.0 }
 0x555   : > { %v2221_v19 = vmax.f32 %v2158_v1, 0.0 }
 0x556   : > { %v2246_v7 = vpack.c.bf16 %v2220_v5, %v2218_v2 }
 0x557   : > { %v2247_v24 = vpack.c.bf16 %v2221_v19, %v2219_v18  ;;  %v2161_v27 = vpop.f32.mrb[92].mxu0 }
 0x558   : > { %v2162_v56 = vadd.f32 %v2161_v27, %v4744_v45  ;;  %v2163_v57 = vpop.f32.mrb[93].mxu0 }
 0x559   : > { %v2164_v31 = vadd.f32 %v2163_v57, %v4747_v6  ;;  %v2165_v22 = vpop.f32.mrb[94].mxu0  ;;  %2651 = vmatprep.mubr.bf16.mxu1 %v2247_v24  ;;  %2764 = vmatprep.mubr.bf16.mxu0 %v2247_v24 }
 0x55a   : > { %v2166_v14 = vadd.f32 %v2165_v22, %v4744_v45  ;;  %v2167_v30 = vpop.f32.mrb[95].mxu0  ;;  %2652 = vmatmul.mubr.bf16.gmra.mrb[120].mxu1 %v2246_v7  ;;  %2765 = vmatmul.mubr.bf16.gmra.mrb[120].mxu0 %v2246_v7  ;;  %v2222_v50 = vmax.f32 %v2162_v56, 0.0 }
 0x55b   : > { %v2168_v53 = vadd.f32 %v2167_v30, %v4747_v6  ;;  %v2223_v55 = vmax.f32 %v2164_v31, 0.0 }
 0x55c   : > { %v2224_v54 = vmax.f32 %v2166_v14, 0.0 }
 0x55d   : > { %v2225_v38 = vmax.f32 %v2168_v53, 0.0 }
 0x55e   : > { %v2248_v0 = vpack.c.bf16 %v2224_v54, %v2222_v50 }
 0x55f   : > { %v2249_v44 = vpack.c.bf16 %v2225_v38, %v2223_v55  ;;  %v2171_v9 = vpop.f32.mrb[96].mxu0 }
 0x560   : > { %v2172_v15 = vadd.f32 %v2171_v9, %v4744_v45  ;;  %v2173_v59 = vpop.f32.mrb[97].mxu0 }
 0x561   : > { %v2174_v4 = vadd.f32 %v2173_v59, %v4747_v6  ;;  %v2175_v13 = vpop.f32.mrb[98].mxu0  ;;  %2661 = vmatprep.mubr.bf16.mxu1 %v2249_v44  ;;  %2774 = vmatprep.mubr.bf16.mxu0 %v2249_v44 }
 0x562   : > { %v2176_v3 = vadd.f32 %v2175_v13, %v4744_v45  ;;  %v2177_v43 = vpop.f32.mrb[99].mxu0  ;;  %2662 = vmatmul.mubr.bf16.gmra.mrb[124].mxu1 %v2248_v0  ;;  %2775 = vmatmul.mubr.bf16.gmra.mrb[124].mxu0 %v2248_v0  ;;  %v2226_v48 = vmax.f32 %v2172_v15, 0.0 }
 0x563   : > { %v2178_v46 = vadd.f32 %v2177_v43, %v4747_v6  ;;  %v2227_v11 = vmax.f32 %v2174_v4, 0.0 }
 0x564   : > { %v2228_v58 = vmax.f32 %v2176_v3, 0.0 }
 0x565   : > { %v2229_v17 = vmax.f32 %v2178_v46, 0.0 }
 0x566   : > { %v2250_v8 = vpack.c.bf16 %v2228_v58, %v2226_v48 }
 0x567   : > { %v2251_v12 = vpack.c.bf16 %v2229_v17, %v2227_v11  ;;  %v2181_v16 = vpop.f32.mrb[100].mxu0 }
 0x568   : > { %v2182_v10 = vadd.f32 %v2181_v16, %v4744_v45  ;;  %v2183_v28 = vpop.f32.mrb[101].mxu0 }
 0x569   : > { %v2184_v29 = vadd.f32 %v2183_v28, %v4747_v6  ;;  %v2185_v60 = vpop.f32.mrb[102].mxu0  ;;  %2671 = vmatprep.mubr.bf16.mxu1 %v2251_v12  ;;  %2784 = vmatprep.mubr.bf16.mxu0 %v2251_v12 }
 0x56a   : > { %v2186_v26 = vadd.f32 %v2185_v60, %v4744_v45  ;;  %v2187_v61 = vpop.f32.mrb[103].mxu0  ;;  %2672 = vmatmul.mubr.bf16.gmra.mrb[128].mxu1 %v2250_v8  ;;  %2785 = vmatmul.mubr.bf16.gmra.mrb[128].mxu0 %v2250_v8  ;;  %v2230_v33 = vmax.f32 %v2182_v10, 0.0 }
 0x56b   : > { %v2188_v62 = vadd.f32 %v2187_v61, %v4747_v6  ;;  %v2231_v32 = vmax.f32 %v2184_v29, 0.0 }
 0x56c   : > { %v2232_v35 = vmax.f32 %v2186_v26, 0.0 }
 0x56d   : > { %v2233_v36 = vmax.f32 %v2188_v62, 0.0 }
 0x56e   : > { %v2252_v37 = vpack.c.bf16 %v2232_v35, %v2230_v33 }
 0x56f   : > { %v2253_v39 = vpack.c.bf16 %v2233_v36, %v2231_v32  ;;  %v2191_v49 = vpop.f32.mrb[104].mxu0 }
 0x570   : > { %v2192_v52 = vadd.f32 %v2191_v49, %v4744_v45  ;;  %v2193_v47 = vpop.f32.mrb[105].mxu0 }
 0x571   : > { %v2194_v23 = vadd.f32 %v2193_v47, %v4747_v6  ;;  %v2195_v21 = vpop.f32.mrb[106].mxu0  ;;  %2681 = vmatprep.mubr.bf16.mxu1 %v2253_v39  ;;  %2794 = vmatprep.mubr.bf16.mxu0 %v2253_v39 }
 0x572   : > { %v2196_v41 = vadd.f32 %v2195_v21, %v4744_v45  ;;  %v2197_v42 = vpop.f32.mrb[107].mxu0  ;;  %2682 = vmatmul.mubr.bf16.gmra.mrb[132].mxu1 %v2252_v37  ;;  %2795 = vmatmul.mubr.bf16.gmra.mrb[132].mxu0 %v2252_v37  ;;  %v2234_v34 = vmax.f32 %v2192_v52, 0.0 }
 0x573   : > { %v2198_v63 = vadd.f32 %v2197_v42, %v4747_v6  ;;  %v2235_v1 = vmax.f32 %v2194_v23, 0.0 }
 0x574   : > { %v2236_v40 = vmax.f32 %v2196_v41, 0.0 }
 0x575   : > { %v2237_v2 = vmax.f32 %v2198_v63, 0.0 }
 0x576   : > { %v2254_v5 = vpack.c.bf16 %v2236_v40, %v2234_v34 }
 0x577   : > { %v2255_v18 = vpack.c.bf16 %v2237_v2, %v2235_v1  ;;  %v2201_v19 = vpop.f32.mrb[108].mxu0 }
 0x578   : > { %v2202_v7 = vadd.f32 %v2201_v19, %v4744_v45  ;;  %v2203_v24 = vpop.f32.mrb[109].mxu0 }
 0x579   : > { %v2204_v27 = vadd.f32 %v2203_v24, %v4747_v6  ;;  %v2205_v56 = vpop.f32.mrb[110].mxu0  ;;  %2691 = vmatprep.mubr.bf16.mxu1 %v2255_v18  ;;  %2804 = vmatprep.mubr.bf16.mxu0 %v2255_v18 }
 0x57a   : > { %v2206_v57 = vadd.f32 %v2205_v56, %v4744_v45  ;;  %v2207_v31 = vpop.f32.mrb[111].mxu0  ;;  %2692 = vmatmul.mubr.bf16.gmra.mrb[136].mxu1 %v2254_v5  ;;  %2805 = vmatmul.mubr.bf16.gmra.mrb[136].mxu0 %v2254_v5  ;;  %v2238_v14 = vmax.f32 %v2202_v7, 0.0 }
 0x57b   : > { %v2208_v22 = vadd.f32 %v2207_v31, %v4747_v6  ;;  %v2239_v53 = vmax.f32 %v2204_v27, 0.0 }
 0x57c   : > { %v2240_v30 = vmax.f32 %v2206_v57, 0.0 }
 0x57d   : > { %v2241_v50 = vmax.f32 %v2208_v22, 0.0 }
 0x57e   : > { %v2256_v54 = vpack.c.bf16 %v2240_v30, %v2238_v14 }
 0x57f   : > { %v2257_v55 = vpack.c.bf16 %v2241_v50, %v2239_v53 }
 0x581   : > { %2701 = vmatprep.mubr.bf16.mxu1 %v2257_v55  ;;  %2814 = vmatprep.mubr.bf16.mxu0 %v2257_v55 }
 0x582   : > { %2702 = vmatmul.mubr.bf16.gmra.mrb[140].mxu1 %v2256_v54  ;;  %2815 = vmatmul.mubr.bf16.gmra.mrb[140].mxu0 %v2256_v54 }
 0x583   : > { %3945 = shalt.err (!%p3942_p11)
}
 0x584   : > { %s3946_s20 = scalar_lea.hbm %s4786_s29, 2048  ;;  %s3950_s28 = scalar_lea.hbm %s4983_s4, 4096 }
 0x585   : > { %p3947_p13 = scmp.ne.s32.totalorder %s4786_s29, %s3946_s20  ;;  %p3951_p6 = scmp.lt.u32.totalorder %s4786_s29, %s4983_s4 }
 0x586   : > { %p3952_p9 = scmp.lt.u32.totalorder %s3950_s28, %s3946_s20  ;;  %p3954_p10 = scmp.lt.u32.totalorder %s3946_s20, %s4786_s29 }
 0x587   : > { %p3948_p5 = pnand %p3947_p13, %p5018_p1 }
 0x588   : > { %p3953_p12 = por %p3952_p9, %p3951_p6 }
 0x589   : > { %p3949_p0 = pneg %p3948_p5 }
 0x58a   : > { %p3955_p2 = por %p3954_p10, %p3953_p12 }
 0x58c   : > { %p3956_p3 = pnand %p3955_p2, %p3949_p0 }
 0x58e   : > { %3959 = shalt.err (!%p3956_p3)
}
 0x58f   : > { %s4013_s8 = smov 128   ;;  %s4014_s9 = smov 8   ;;  %v2269_v45 = vsub.s32 2, %v4651_v20  ;;  %v447_v6 = vld [vmem:[#allocation5 + $0x4] ss:$8 sm:$0xf] }
 0x590   : > { %3538 = dma.vmem_to_hbm [thread:$0]  (%p5018_p1), %s4788_s10, 2048, %s4786_s29, %s4792_s13, %s4013_s8, %s4013_s8, %s4014_s9   ;;  %v2273_v38 = vsub.s32 3, %v4651_v20  ;;  %v4820_v0 = vrot.slane %v447_v6, %v4654_v51  ;;  %v4825_v9 = vrot.slane %v447_v6, %v4657_v25 }
 0x591   : > { %s3334_s11 = sshll.u32 %s5025_s30, 5  ;;  %v4822_v44 = vrot.slane %v447_v6, %v2269_v45 }
 0x592   : > { %v4827_v15 = vrot.slane %v447_v6, %v2273_v38  ;;  %s4832_s25 = scalar_lea.vmem %s4982_s3, %s3334_s11 }
 0x61d   : > { %v2633_v59 = vpop.f32.mrb[112].mxu1  ;;  %v2746_v20 = vpop.f32.mrb[112].mxu0 }
 0x61e   : > { %v2634_v51 = vadd.f32 %v2633_v59, %v4820_v0  ;;  %v2747_v4 = vadd.f32 %v2746_v20, %v4822_v44  ;;  %v2635_v13 = vpop.f32.mrb[113].mxu1  ;;  %v2748_v25 = vpop.f32.mrb[113].mxu0 }
 0x61f   : > { %v2636_v3 = vadd.f32 %v2635_v13, %v4825_v9  ;;  %v2749_v43 = vadd.f32 %v2748_v25, %v4827_v15  ;;  %v2637_v46 = vpop.f32.mrb[114].mxu1  ;;  %v2750_v48 = vpop.f32.mrb[114].mxu0 }
 0x620   : > { %2825 = vst [vmem:[%s4832_s25] sm:$0xff] %v2634_v51  ;;  %2827 = vst [vmem:[%s4832_s25 + $0x10] sm:$0xff] %v2747_v4  ;;  %v2638_v58 = vadd.f32 %v2637_v46, %v4820_v0  ;;  %v2751_v11 = vadd.f32 %v2750_v48, %v4822_v44  ;;  %v2639_v17 = vpop.f32.mrb[115].mxu1  ;;  %v2752_v8 = vpop.f32.mrb[115].mxu0 }
 0x621   : > { %2826 = vst [vmem:[%s4832_s25 + $0x8] sm:$0xff] %v2636_v3  ;;  %2828 = vst [vmem:[%s4832_s25 + $0x18] sm:$0xff] %v2749_v43  ;;  %v2640_v12 = vadd.f32 %v2639_v17, %v4825_v9  ;;  %v2753_v16 = vadd.f32 %v2752_v8, %v4827_v15 }
 0x622   : > { %2829 = vst [vmem:[%s4832_s25 + $0x20] sm:$0xff] %v2638_v58  ;;  %2831 = vst [vmem:[%s4832_s25 + $0x30] sm:$0xff] %v2751_v11 }
 0x623   : > { %2830 = vst [vmem:[%s4832_s25 + $0x28] sm:$0xff] %v2640_v12  ;;  %2832 = vst [vmem:[%s4832_s25 + $0x38] sm:$0xff] %v2753_v16 }
 0x625   : > { %v2643_v10 = vpop.f32.mrb[116].mxu1  ;;  %v2756_v28 = vpop.f32.mrb[116].mxu0 }
 0x626   : > { %v2644_v29 = vadd.f32 %v2643_v10, %v4820_v0  ;;  %v2757_v60 = vadd.f32 %v2756_v28, %v4822_v44  ;;  %v2645_v26 = vpop.f32.mrb[117].mxu1  ;;  %v2758_v61 = vpop.f32.mrb[117].mxu0 }
 0x627   : > { %v2646_v62 = vadd.f32 %v2645_v26, %v4825_v9  ;;  %v2759_v33 = vadd.f32 %v2758_v61, %v4827_v15  ;;  %v2647_v35 = vpop.f32.mrb[118].mxu1  ;;  %v2760_v32 = vpop.f32.mrb[118].mxu0 }
 0x628   : > { %2833 = vst [vmem:[%s4832_s25 + $0x40] sm:$0xff] %v2644_v29  ;;  %2835 = vst [vmem:[%s4832_s25 + $0x50] sm:$0xff] %v2757_v60  ;;  %v2648_v36 = vadd.f32 %v2647_v35, %v4820_v0  ;;  %v2761_v37 = vadd.f32 %v2760_v32, %v4822_v44  ;;  %v2649_v39 = vpop.f32.mrb[119].mxu1  ;;  %v2762_v49 = vpop.f32.mrb[119].mxu0 }
 0x629   : > { %2834 = vst [vmem:[%s4832_s25 + $0x48] sm:$0xff] %v2646_v62  ;;  %2836 = vst [vmem:[%s4832_s25 + $0x58] sm:$0xff] %v2759_v33  ;;  %v2650_v52 = vadd.f32 %v2649_v39, %v4825_v9  ;;  %v2763_v47 = vadd.f32 %v2762_v49, %v4827_v15 }
 0x62a   : > { %2837 = vst [vmem:[%s4832_s25 + $0x60] sm:$0xff] %v2648_v36  ;;  %2839 = vst [vmem:[%s4832_s25 + $0x70] sm:$0xff] %v2761_v37 }
 0x62b   : > { %2838 = vst [vmem:[%s4832_s25 + $0x68] sm:$0xff] %v2650_v52  ;;  %2840 = vst [vmem:[%s4832_s25 + $0x78] sm:$0xff] %v2763_v47 }
 0x62d   : > { %v2653_v23 = vpop.f32.mrb[120].mxu1  ;;  %v2766_v21 = vpop.f32.mrb[120].mxu0 }
 0x62e   : > { %v2654_v41 = vadd.f32 %v2653_v23, %v4820_v0  ;;  %v2767_v42 = vadd.f32 %v2766_v21, %v4822_v44  ;;  %v2655_v63 = vpop.f32.mrb[121].mxu1  ;;  %v2768_v34 = vpop.f32.mrb[121].mxu0 }
 0x62f   : > { %v2656_v40 = vadd.f32 %v2655_v63, %v4825_v9  ;;  %v2769_v1 = vadd.f32 %v2768_v34, %v4827_v15  ;;  %v2657_v2 = vpop.f32.mrb[122].mxu1  ;;  %v2770_v5 = vpop.f32.mrb[122].mxu0 }
 0x630   : > { %2841 = vst [vmem:[%s4832_s25 + $0x80] sm:$0xff] %v2654_v41  ;;  %2843 = vst [vmem:[%s4832_s25 + $0x90] sm:$0xff] %v2767_v42  ;;  %v2658_v18 = vadd.f32 %v2657_v2, %v4820_v0  ;;  %v2771_v19 = vadd.f32 %v2770_v5, %v4822_v44  ;;  %v2659_v7 = vpop.f32.mrb[123].mxu1  ;;  %v2772_v24 = vpop.f32.mrb[123].mxu0 }
 0x631   : > { %2842 = vst [vmem:[%s4832_s25 + $0x88] sm:$0xff] %v2656_v40  ;;  %2844 = vst [vmem:[%s4832_s25 + $0x98] sm:$0xff] %v2769_v1  ;;  %v2660_v27 = vadd.f32 %v2659_v7, %v4825_v9  ;;  %v2773_v56 = vadd.f32 %v2772_v24, %v4827_v15 }
 0x632   : > { %2845 = vst [vmem:[%s4832_s25 + $0xa0] sm:$0xff] %v2658_v18  ;;  %2847 = vst [vmem:[%s4832_s25 + $0xb0] sm:$0xff] %v2771_v19 }
 0x633   : > { %2846 = vst [vmem:[%s4832_s25 + $0xa8] sm:$0xff] %v2660_v27  ;;  %2848 = vst [vmem:[%s4832_s25 + $0xb8] sm:$0xff] %v2773_v56 }
 0x635   : > { %v2663_v57 = vpop.f32.mrb[124].mxu1  ;;  %v2776_v31 = vpop.f32.mrb[124].mxu0 }
 0x636   : > { %v2664_v22 = vadd.f32 %v2663_v57, %v4820_v0  ;;  %v2777_v14 = vadd.f32 %v2776_v31, %v4822_v44  ;;  %v2665_v30 = vpop.f32.mrb[125].mxu1  ;;  %v2778_v53 = vpop.f32.mrb[125].mxu0 }
 0x637   : > { %v2666_v50 = vadd.f32 %v2665_v30, %v4825_v9  ;;  %v2779_v54 = vadd.f32 %v2778_v53, %v4827_v15  ;;  %v2667_v55 = vpop.f32.mrb[126].mxu1  ;;  %v2780_v45 = vpop.f32.mrb[126].mxu0 }
 0x638   : > { %2849 = vst [vmem:[%s4832_s25 + $0xc0] sm:$0xff] %v2664_v22  ;;  %2851 = vst [vmem:[%s4832_s25 + $0xd0] sm:$0xff] %v2777_v14  ;;  %v2668_v6 = vadd.f32 %v2667_v55, %v4820_v0  ;;  %v2781_v38 = vadd.f32 %v2780_v45, %v4822_v44  ;;  %v2669_v59 = vpop.f32.mrb[127].mxu1  ;;  %v2782_v20 = vpop.f32.mrb[127].mxu0 }
 0x639   : > { %2850 = vst [vmem:[%s4832_s25 + $0xc8] sm:$0xff] %v2666_v50  ;;  %2852 = vst [vmem:[%s4832_s25 + $0xd8] sm:$0xff] %v2779_v54  ;;  %v2670_v51 = vadd.f32 %v2669_v59, %v4825_v9  ;;  %v2783_v4 = vadd.f32 %v2782_v20, %v4827_v15 }
 0x63a   : > { %2853 = vst [vmem:[%s4832_s25 + $0xe0] sm:$0xff] %v2668_v6  ;;  %2855 = vst [vmem:[%s4832_s25 + $0xf0] sm:$0xff] %v2781_v38 }
 0x63b   : > { %2854 = vst [vmem:[%s4832_s25 + $0xe8] sm:$0xff] %v2670_v51  ;;  %2856 = vst [vmem:[%s4832_s25 + $0xf8] sm:$0xff] %v2783_v4 }
 0x63d   : > { %v2673_v13 = vpop.f32.mrb[128].mxu1  ;;  %v2786_v25 = vpop.f32.mrb[128].mxu0 }
 0x63e   : > { %v2674_v3 = vadd.f32 %v2673_v13, %v4820_v0  ;;  %v2787_v43 = vadd.f32 %v2786_v25, %v4822_v44  ;;  %v2675_v46 = vpop.f32.mrb[129].mxu1  ;;  %v2788_v48 = vpop.f32.mrb[129].mxu0 }
 0x63f   : > { %v2676_v58 = vadd.f32 %v2675_v46, %v4825_v9  ;;  %v2789_v11 = vadd.f32 %v2788_v48, %v4827_v15  ;;  %v2677_v17 = vpop.f32.mrb[130].mxu1  ;;  %v2790_v8 = vpop.f32.mrb[130].mxu0 }
 0x640   : > { %2857 = vst [vmem:[%s4832_s25 + $0x100] sm:$0xff] %v2674_v3  ;;  %2859 = vst [vmem:[%s4832_s25 + $0x110] sm:$0xff] %v2787_v43  ;;  %v2678_v12 = vadd.f32 %v2677_v17, %v4820_v0  ;;  %v2791_v16 = vadd.f32 %v2790_v8, %v4822_v44  ;;  %v2679_v10 = vpop.f32.mrb[131].mxu1  ;;  %v2792_v28 = vpop.f32.mrb[131].mxu0 }
 0x641   : > { %2858 = vst [vmem:[%s4832_s25 + $0x108] sm:$0xff] %v2676_v58  ;;  %2860 = vst [vmem:[%s4832_s25 + $0x118] sm:$0xff] %v2789_v11  ;;  %v2680_v29 = vadd.f32 %v2679_v10, %v4825_v9  ;;  %v2793_v60 = vadd.f32 %v2792_v28, %v4827_v15 }
 0x642   : > { %2861 = vst [vmem:[%s4832_s25 + $0x120] sm:$0xff] %v2678_v12  ;;  %2863 = vst [vmem:[%s4832_s25 + $0x130] sm:$0xff] %v2791_v16 }
 0x643   : > { %2862 = vst [vmem:[%s4832_s25 + $0x128] sm:$0xff] %v2680_v29  ;;  %2864 = vst [vmem:[%s4832_s25 + $0x138] sm:$0xff] %v2793_v60 }
 0x645   : > { %v2683_v26 = vpop.f32.mrb[132].mxu1  ;;  %v2796_v61 = vpop.f32.mrb[132].mxu0 }
 0x646   : > { %v2684_v62 = vadd.f32 %v2683_v26, %v4820_v0  ;;  %v2797_v33 = vadd.f32 %v2796_v61, %v4822_v44  ;;  %v2685_v35 = vpop.f32.mrb[133].mxu1  ;;  %v2798_v32 = vpop.f32.mrb[133].mxu0 }
 0x647   : > { %v2686_v36 = vadd.f32 %v2685_v35, %v4825_v9  ;;  %v2799_v37 = vadd.f32 %v2798_v32, %v4827_v15  ;;  %v2687_v39 = vpop.f32.mrb[134].mxu1  ;;  %v2800_v49 = vpop.f32.mrb[134].mxu0 }
 0x648   : > { %2865 = vst [vmem:[%s4832_s25 + $0x140] sm:$0xff] %v2684_v62  ;;  %2867 = vst [vmem:[%s4832_s25 + $0x150] sm:$0xff] %v2797_v33  ;;  %v2688_v52 = vadd.f32 %v2687_v39, %v4820_v0  ;;  %v2801_v47 = vadd.f32 %v2800_v49, %v4822_v44  ;;  %v2689_v23 = vpop.f32.mrb[135].mxu1  ;;  %v2802_v21 = vpop.f32.mrb[135].mxu0 }
 0x649   : > { %2866 = vst [vmem:[%s4832_s25 + $0x148] sm:$0xff] %v2686_v36  ;;  %2868 = vst [vmem:[%s4832_s25 + $0x158] sm:$0xff] %v2799_v37  ;;  %v2690_v41 = vadd.f32 %v2689_v23, %v4825_v9  ;;  %v2803_v42 = vadd.f32 %v2802_v21, %v4827_v15 }
 0x64a   : > { %2869 = vst [vmem:[%s4832_s25 + $0x160] sm:$0xff] %v2688_v52  ;;  %2871 = vst [vmem:[%s4832_s25 + $0x170] sm:$0xff] %v2801_v47 }
 0x64b   : > { %2870 = vst [vmem:[%s4832_s25 + $0x168] sm:$0xff] %v2690_v41  ;;  %2872 = vst [vmem:[%s4832_s25 + $0x178] sm:$0xff] %v2803_v42 }
 0x64d   : > { %v2693_v63 = vpop.f32.mrb[136].mxu1  ;;  %v2806_v34 = vpop.f32.mrb[136].mxu0 }
 0x64e   : > { %v2694_v40 = vadd.f32 %v2693_v63, %v4820_v0  ;;  %v2807_v1 = vadd.f32 %v2806_v34, %v4822_v44  ;;  %v2695_v2 = vpop.f32.mrb[137].mxu1  ;;  %v2808_v5 = vpop.f32.mrb[137].mxu0 }
 0x64f   : > { %v2696_v18 = vadd.f32 %v2695_v2, %v4825_v9  ;;  %v2809_v19 = vadd.f32 %v2808_v5, %v4827_v15  ;;  %v2697_v7 = vpop.f32.mrb[138].mxu1  ;;  %v2810_v24 = vpop.f32.mrb[138].mxu0 }
 0x650   : > { %2873 = vst [vmem:[%s4832_s25 + $0x180] sm:$0xff] %v2694_v40  ;;  %2875 = vst [vmem:[%s4832_s25 + $0x190] sm:$0xff] %v2807_v1  ;;  %v2698_v27 = vadd.f32 %v2697_v7, %v4820_v0  ;;  %v2811_v56 = vadd.f32 %v2810_v24, %v4822_v44  ;;  %v2699_v57 = vpop.f32.mrb[139].mxu1  ;;  %v2812_v31 = vpop.f32.mrb[139].mxu0 }
 0x651   : > { %2874 = vst [vmem:[%s4832_s25 + $0x188] sm:$0xff] %v2696_v18  ;;  %2876 = vst [vmem:[%s4832_s25 + $0x198] sm:$0xff] %v2809_v19  ;;  %v2700_v22 = vadd.f32 %v2699_v57, %v4825_v9  ;;  %v2813_v14 = vadd.f32 %v2812_v31, %v4827_v15 }
 0x652   : > { %2877 = vst [vmem:[%s4832_s25 + $0x1a0] sm:$0xff] %v2698_v27  ;;  %2879 = vst [vmem:[%s4832_s25 + $0x1b0] sm:$0xff] %v2811_v56 }
 0x653   : > { %2878 = vst [vmem:[%s4832_s25 + $0x1a8] sm:$0xff] %v2700_v22  ;;  %2880 = vst [vmem:[%s4832_s25 + $0x1b8] sm:$0xff] %v2813_v14 }
 0x655   : > { %v2703_v30 = vpop.f32.mrb[140].mxu1  ;;  %v2816_v53 = vpop.f32.mrb[140].mxu0 }
 0x656   : > { %v2704_v50 = vadd.f32 %v2703_v30, %v4820_v0  ;;  %v2817_v54 = vadd.f32 %v2816_v53, %v4822_v44  ;;  %v2705_v55 = vpop.f32.mrb[141].mxu1  ;;  %v2818_v45 = vpop.f32.mrb[141].mxu0 }
 0x657   : > { %v2706_v6 = vadd.f32 %v2705_v55, %v4825_v9  ;;  %v2819_v38 = vadd.f32 %v2818_v45, %v4827_v15  ;;  %v2707_v59 = vpop.f32.mrb[142].mxu1  ;;  %v2820_v20 = vpop.f32.mrb[142].mxu0 }
 0x658   : > { %2881 = vst [vmem:[%s4832_s25 + $0x1c0] sm:$0xff] %v2704_v50  ;;  %2883 = vst [vmem:[%s4832_s25 + $0x1d0] sm:$0xff] %v2817_v54  ;;  %v2708_v51 = vadd.f32 %v2707_v59, %v4820_v0  ;;  %v2821_v4 = vadd.f32 %v2820_v20, %v4822_v44  ;;  %v2709_v13 = vpop.f32.mrb[143].mxu1  ;;  %v2822_v25 = vpop.f32.mrb[143].mxu0 }
 0x659   : > { %2882 = vst [vmem:[%s4832_s25 + $0x1c8] sm:$0xff] %v2706_v6  ;;  %2884 = vst [vmem:[%s4832_s25 + $0x1d8] sm:$0xff] %v2819_v38  ;;  %v2710_v3 = vadd.f32 %v2709_v13, %v4825_v9  ;;  %v2823_v43 = vadd.f32 %v2822_v25, %v4827_v15 }
 0x65a   : > { %2885 = vst [vmem:[%s4832_s25 + $0x1e0] sm:$0xff] %v2708_v51  ;;  %2887 = vst [vmem:[%s4832_s25 + $0x1f0] sm:$0xff] %v2821_v4 }
 0x65b   : > { %2886 = vst [vmem:[%s4832_s25 + $0x1e8] sm:$0xff] %v2710_v3  ;;  %2888 = vst [vmem:[%s4832_s25 + $0x1f8] sm:$0xff] %v2823_v43 }
 0x65c PF: > { %p3555_p1 = scmp.ge.s32.totalorder %s4002_s18, 2  ;;  %s2937_s30 = sand.u32 1, %s3990_s15  }
 0x65d   : > { %p5019_p4 = scmp.ne.s32.totalorder %s4988_s26, 0  ;;  %s2938_s10 = scalar_lea.sflag [#allocation4], %s2937_s30 }
 0x65f   : > { %p3548_p7 = pnand %p3555_p1, %p5019_p4 }
 0x661   : > { %3985 = dma.done.wait (!%p3548_p7), %s2938_s10, 2048  }
 0x662   : > { %3987 = vsyncadd (!%p3548_p7), %s2938_s10, 4294965248  ;;  %p17_p8 = scmp.ge.s32.totalorder %s4065_s21, 4   ;;  %s5020_s15 = smov %s3994_s16 }
 0x663   : > { %s5021_s16 = smov %s3998_s17  ;;  %s5022_s17 = smov %s4076_s24 }
 0x664   : > { %s5023_s18 = smov %s4065_s21  ;;  %19 = sbr.rel (!%p17_p8) target bundleno = 5 (0x5), region = 91 }
 0x66b   :  { %2943 = vsyncpa [#allocation3], 1 }
 0x66c   :  { %2945 = vsyncpa [#allocation3 + $0x1], 1 }
 0x66d   :  { %2946 = vsyncpa [#allocation6], 1 }
 0x66e   :  { %2947 = vsyncpa [#allocation4], 1 }
 0x66f   :  { %2949 = vsyncpa [#allocation4 + $0x1], 1 }

</bundles_post_ra>
